<compile_context>
chip_gen: v7x
topology: tpu7x:2x2x1
jax: 0.10.0
libtpu: 0.0.40
codegen_flags: <defaults>
</compile_context>

<pallas_src>
import jax
import jax.numpy as jnp
from jax.experimental import pallas as pl
from jax.experimental.pallas import tpu as pltpu

EMB = 16       # emb_dim
K = 3          # knn k (module uses k=10; shrunk so k <= N-1 for the tiny synthetic graph)
OUT_DIM = 2    # lin2 output features
OUT_PAD = 128  # lane-dense padding for the kernel's single output store


# ---------------------------------------------------------------------------
# Fused kernel factory
# ---------------------------------------------------------------------------
def _make_fused_kernel(num_layers, k, emb_dim):
    n_layer_refs = 9 * num_layers

    def kernel(*refs):
        (x_ref, pos_ref, adj_ref, pool_ref, w_emb_ref, b_emb_ref) = refs[:6]
        layer_refs = refs[6:6 + n_layer_refs]
        w1_ref, b1_ref, w2_ref, b2_ref = refs[6 + n_layer_refs:6 + n_layer_refs + 4]
        o_ref = refs[-1]

        f32 = jnp.float32
        N = adj_ref.shape[0]
        INF = f32(1e30)

        # h = emb_in(data.h).relu()
        h = jnp.maximum(
            jnp.dot(x_ref[...], w_emb_ref[...], preferred_element_type=f32)
            + b_emb_ref[...], 0.0)                               # [N, EMB]
        pos = pos_ref[...]                                       # [N, 2]
        allowed = adj_ref[...] > 0.5                             # same graph & no self loop

        row_i = jax.lax.broadcasted_iota(jnp.int32, (N, N), 0)
        col_i = jax.lax.broadcasted_iota(jnp.int32, (N, N), 1)
        eye = row_i == col_i
        col_f = col_i.astype(f32)

        def col_to_row(v):                                       # [N,1] -> [1,N] w/o transpose
            return jnp.sum(jnp.where(eye, v, 0.0), axis=0, keepdims=True)

        for l in range(num_layers):
            (w_mi, w_mj, w_md, b_m, w_p, b_p, w_uh, w_um, b_u) = tuple(
                r[...] for r in layer_refs[9 * l:9 * (l + 1)])

            # ---- kNN graph on the current positions (dynamic_edge='DE') ----
            # TODO(synk): for large N compute d2 as a Gram matrix on the MXU instead of
            # broadcast differences.
            dx = pos[:, 0:1] - col_to_row(pos[:, 0:1])           # [N, N]
            dy = pos[:, 1:2] - col_to_row(pos[:, 1:2])
            d2 = jnp.where(allowed, dx * dx + dy * dy, INF)

            # h_i term of mlp_msg is identical for every neighbour -> hoist out of k-loop.
            hi_term = jnp.dot(h, w_mi, preferred_element_type=f32) + b_m

            msg_aggr = jnp.zeros((N, emb_dim), f32)
            pos_aggr = jnp.zeros((N, 2), f32)

            for _ in range(k):
                # one-hot of each node's nearest remaining neighbour (ties -> lowest index)
                row_min = jnp.min(d2, axis=-1, keepdims=True)
                cand = jnp.where(d2 <= row_min, col_f, f32(N))
                amin = jnp.min(cand, axis=-1, keepdims=True)
                sel = (col_f == amin).astype(f32)                # [N, N]

                h_j = jnp.dot(sel, h, preferred_element_type=f32)      # gather h[src]
                pos_j = jnp.dot(sel, pos, preferred_element_type=f32)  # gather pos[src]
                pd = pos - pos_j                                       # pos_i - pos_j
                dist = jnp.sqrt(jnp.sum(pd * pd, axis=-1, keepdims=True))

                msg = jnp.maximum(                                     # mlp_msg + ReLU
                    hi_term + jnp.dot(h_j, w_mj, preferred_element_type=f32)
                    + dist * w_md, 0.0)
                gate = jnp.maximum(                                    # mlp_pos + ReLU
                    jnp.dot(msg, w_p, preferred_element_type=f32) + b_p, 0.0)

                msg_aggr = msg_aggr + msg            # scatter-add over dst (aggr='add')
                pos_aggr = pos_aggr + pd * gate      # scatter sum; mean taken below
                d2 = jnp.where(sel > 0.5, INF, d2)   # drop the chosen neighbour

            pos_aggr = pos_aggr * f32(1.0 / k)       # scatter-'mean': each node has exactly k edges

            # ---- mlp_upd + PairNorm (residual=False) ----
            h_new = jnp.maximum(
                jnp.dot(h, w_uh, preferred_element_type=f32)
                + jnp.dot(msg_aggr, w_um, preferred_element_type=f32) + b_u, 0.0)
            h_c = h_new - jnp.mean(h_new, axis=0, keepdims=True)
            denom = jnp.sqrt(1e-6 + jnp.mean(jnp.sum(h_c * h_c, axis=-1, keepdims=True)))
            h = h_c / denom
            pos = pos + pos_aggr

        # ---- readout: global_max_pool + lin1 + relu + (dropout: identity in eval) + lin2 ----
        mask = pool_ref[...]                                     # [N, G]
        G = mask.shape[1]
        # TODO(synk): for large G replace this static per-graph loop with a segment-max.
        rows = [jnp.max(h + (mask[:, g:g + 1] - 1.0) * INF, axis=0, keepdims=True)
                for g in range(G)]
        pooled = rows[0] if G == 1 else jnp.concatenate(rows, axis=0)   # [G, EMB]
        z = jnp.maximum(
            jnp.dot(pooled, w1_ref[...], preferred_element_type=f32) + b1_ref[...], 0.0)
        o_ref[...] = jnp.dot(z, w2_ref[...], preferred_element_type=f32) + b2_ref[...]

    return kernel


# ---------------------------------------------------------------------------
# Wrapper: one pallas_call for the whole forward pass
# ---------------------------------------------------------------------------
def mp_ge_forward(params, h_raw, pos, batch, num_graphs):
    N = h_raw.shape[0]
    G = num_graphs
    # Static (position-independent) masks, built once in plain-JAX glue.
    same = batch[:, None] == batch[None, :]
    adj_mask = (same & ~jnp.eye(N, dtype=bool)).astype(jnp.float32)            # knn candidates
    pool_mask = (batch[:, None] ==
                 jnp.arange(G, dtype=jnp.int32)[None, :]).astype(jnp.float32)  # [N, G]

    w_emb, b_emb = params['emb_in']
    w1, b1 = params['lin1']
    w2p, b2p = params['lin2']             # already padded to OUT_PAD output lanes

    inputs = [h_raw, pos, adj_mask, pool_mask, w_emb, b_emb]
    for lp in params['convs']:
        inputs += [lp['w_mi'], lp['w_mj'], lp['w_md'], lp['b_m'],
                   lp['w_p'], lp['b_p'], lp['w_uh'], lp['w_um'], lp['b_u']]
    inputs += [w1, b1, w2p, b2p]

    kernel = _make_fused_kernel(len(params['convs']), K, EMB)
    out_pad = pl.pallas_call(
        kernel,
        out_shape=jax.ShapeDtypeStruct((G, OUT_PAD), jnp.float32),
        in_specs=[pl.BlockSpec(memory_space=pltpu.MemorySpace.VMEM)] * len(inputs),
        out_specs=pl.BlockSpec(memory_space=pltpu.MemorySpace.VMEM),
    )(*inputs)
    return out_pad[:, :OUT_DIM]


# ---------------------------------------------------------------------------
# Parameter init (matches torch Linear init convention)
# ---------------------------------------------------------------------------
def linear_params(key, fan_in, fan_out):
    kw, kb = jax.random.split(key)
    bound = 1.0 / jnp.sqrt(jnp.float32(fan_in))
    w = jax.random.uniform(kw, (fan_in, fan_out), jnp.float32, -bound, bound)
    b = jax.random.uniform(kb, (1, fan_out), jnp.float32, -bound, bound)
    return w, b


def init_params(key, num_layers=2, emb_dim=EMB):
    keys = jax.random.split(key, 3 + num_layers)
    w2, b2 = linear_params(keys[2], emb_dim, OUT_DIM)
    # lane-dense final projection: pad out_dim 2 -> 128 with zeros, sliced back outside
    w2p = jnp.zeros((emb_dim, OUT_PAD), jnp.float32).at[:, :OUT_DIM].set(w2)
    b2p = jnp.zeros((1, OUT_PAD), jnp.float32).at[:, :OUT_DIM].set(b2)
    params = {'emb_in': linear_params(keys[0], 5, emb_dim),
              'lin1': linear_params(keys[1], emb_dim, emb_dim),
              'lin2': (w2p, b2p),
              'convs': []}
    for l in range(num_layers):
        kk = jax.random.split(keys[3 + l], 3)
        # Linear(2D+1, D) split row-wise to match cat([h_i, h_j, dist]) @ W
        w_msg, b_msg = linear_params(kk[0], 2 * emb_dim + 1, emb_dim)
        w_pos_, b_pos_ = linear_params(kk[1], emb_dim, 2)
        w_upd, b_upd = linear_params(kk[2], 2 * emb_dim, emb_dim)
        params['convs'].append(dict(
            w_mi=w_msg[:emb_dim], w_mj=w_msg[emb_dim:2 * emb_dim],
            w_md=w_msg[2 * emb_dim:], b_m=b_msg,
            w_p=w_pos_, b_p=b_pos_,
            w_uh=w_upd[:emb_dim], w_um=w_upd[emb_dim:], b_u=b_upd))
    return params


if __name__ == "__main__":
    key = jax.random.PRNGKey(0)
    N, G = 8, 1
    k_h, k_pos, k_par = jax.random.split(key, 3)
    h_raw = jax.random.normal(k_h, (N, 5), jnp.float32)    # data.h (RW positional-encoding feats)
    pos = jax.random.normal(k_pos, (N, 2), jnp.float32)    # data.pos
    batch = jnp.zeros((N,), jnp.int32)                     # data.batch (single graph)
    params = init_params(k_par, num_layers=2, emb_dim=EMB)

    fwd = jax.jit(mp_ge_forward, static_argnums=(4,))
    out = fwd(params, h_raw, pos, batch, G)
    out = jax.block_until_ready(out)
    assert out.shape == (G, 2) and out.dtype == jnp.float32
    assert bool(jnp.all(jnp.isfinite(out)))
    print("KERNEL_OK")
</pallas_src>

<mosaic_0001>
module attributes {stable_mosaic.version = 11 : i64} {
  func.func @kernel(%arg0: memref<8x5xf32, #tpu.memory_space<vmem>>, %arg1: memref<8x2xf32, #tpu.memory_space<vmem>>, %arg2: memref<8x8xf32, #tpu.memory_space<vmem>>, %arg3: memref<8x1xf32, #tpu.memory_space<vmem>>, %arg4: memref<5x16xf32, #tpu.memory_space<vmem>>, %arg5: memref<1x16xf32, #tpu.memory_space<vmem>>, %arg6: memref<16x16xf32, #tpu.memory_space<vmem>>, %arg7: memref<16x16xf32, #tpu.memory_space<vmem>>, %arg8: memref<1x16xf32, #tpu.memory_space<vmem>>, %arg9: memref<1x16xf32, #tpu.memory_space<vmem>>, %arg10: memref<16x2xf32, #tpu.memory_space<vmem>>, %arg11: memref<1x2xf32, #tpu.memory_space<vmem>>, %arg12: memref<16x16xf32, #tpu.memory_space<vmem>>, %arg13: memref<16x16xf32, #tpu.memory_space<vmem>>, %arg14: memref<1x16xf32, #tpu.memory_space<vmem>>, %arg15: memref<16x16xf32, #tpu.memory_space<vmem>>, %arg16: memref<16x16xf32, #tpu.memory_space<vmem>>, %arg17: memref<1x16xf32, #tpu.memory_space<vmem>>, %arg18: memref<1x16xf32, #tpu.memory_space<vmem>>, %arg19: memref<16x2xf32, #tpu.memory_space<vmem>>, %arg20: memref<1x2xf32, #tpu.memory_space<vmem>>, %arg21: memref<16x16xf32, #tpu.memory_space<vmem>>, %arg22: memref<16x16xf32, #tpu.memory_space<vmem>>, %arg23: memref<1x16xf32, #tpu.memory_space<vmem>>, %arg24: memref<16x16xf32, #tpu.memory_space<vmem>>, %arg25: memref<1x16xf32, #tpu.memory_space<vmem>>, %arg26: memref<16x128xf32, #tpu.memory_space<vmem>>, %arg27: memref<1x128xf32, #tpu.memory_space<vmem>>, %arg28: memref<1x128xf32, #tpu.memory_space<vmem>>) attributes {dimension_semantics = [], scalar_prefetch = 0 : i64, scratch_operands = 0 : i64, tpu.core_type = #tpu.core_type<tc>} {
    %c0 = arith.constant 0 : index
    %c0_0 = arith.constant 0 : index
    %0 = vector.load %arg0[%c0, %c0_0] : memref<8x5xf32, #tpu.memory_space<vmem>>, vector<8x5xf32>
    %c0_1 = arith.constant 0 : index
    %c0_2 = arith.constant 0 : index
    %1 = vector.load %arg4[%c0_1, %c0_2] : memref<5x16xf32, #tpu.memory_space<vmem>>, vector<5x16xf32>
    %cst = arith.constant dense<0.000000e+00> : vector<8x16xf32>
    %2 = tpu.matmul %0, %1, %cst {dimension_numbers = #tpu.dot_dimension_numbers<[1], [0], [0], [1], [0, 0, 1, 1], [], []>} : vector<8x5xf32>, vector<5x16xf32>, vector<8x16xf32> -> vector<8x16xf32>
    %c0_3 = arith.constant 0 : index
    %c0_4 = arith.constant 0 : index
    %3 = vector.load %arg5[%c0_3, %c0_4] : memref<1x16xf32, #tpu.memory_space<vmem>>, vector<1x16xf32>
    %4 = vector.broadcast %3 : vector<1x16xf32> to vector<8x16xf32>
    %5 = arith.addf %2, %4 : vector<8x16xf32>
    %cst_5 = arith.constant 0.000000e+00 : f32
    %6 = vector.broadcast %cst_5 : f32 to vector<8x16xf32>
    %7 = arith.maximumf %5, %6 : vector<8x16xf32>
    %c0_6 = arith.constant 0 : index
    %c0_7 = arith.constant 0 : index
    %8 = vector.load %arg1[%c0_6, %c0_7] : memref<8x2xf32, #tpu.memory_space<vmem>>, vector<8x2xf32>
    %c0_8 = arith.constant 0 : index
    %c0_9 = arith.constant 0 : index
    %9 = vector.load %arg2[%c0_8, %c0_9] : memref<8x8xf32, #tpu.memory_space<vmem>>, vector<8x8xf32>
    %cst_10 = arith.constant 5.000000e-01 : f32
    %10 = vector.broadcast %cst_10 : f32 to vector<8x8xf32>
    %11 = arith.cmpf ogt, %9, %10 : vector<8x8xf32>
    %12 = tpu.iota {dimensions = array<i32: 0>} : vector<8x8xi32>
    %13 = tpu.iota {dimensions = array<i32: 1>} : vector<8x8xi32>
    %14 = arith.cmpi eq, %12, %13 : vector<8x8xi32>
    %15 = arith.sitofp %13 : vector<8x8xi32> to vector<8x8xf32>
    %c0_11 = arith.constant 0 : index
    %c0_12 = arith.constant 0 : index
    %16 = vector.load %arg6[%c0_11, %c0_12] : memref<16x16xf32, #tpu.memory_space<vmem>>, vector<16x16xf32>
    %c0_13 = arith.constant 0 : index
    %c0_14 = arith.constant 0 : index
    %17 = vector.load %arg7[%c0_13, %c0_14] : memref<16x16xf32, #tpu.memory_space<vmem>>, vector<16x16xf32>
    %c0_15 = arith.constant 0 : index
    %c0_16 = arith.constant 0 : index
    %18 = vector.load %arg8[%c0_15, %c0_16] : memref<1x16xf32, #tpu.memory_space<vmem>>, vector<1x16xf32>
    %c0_17 = arith.constant 0 : index
    %c0_18 = arith.constant 0 : index
    %19 = vector.load %arg9[%c0_17, %c0_18] : memref<1x16xf32, #tpu.memory_space<vmem>>, vector<1x16xf32>
    %c0_19 = arith.constant 0 : index
    %c0_20 = arith.constant 0 : index
    %20 = vector.load %arg10[%c0_19, %c0_20] : memref<16x2xf32, #tpu.memory_space<vmem>>, vector<16x2xf32>
    %c0_21 = arith.constant 0 : index
    %c0_22 = arith.constant 0 : index
    %21 = vector.load %arg11[%c0_21, %c0_22] : memref<1x2xf32, #tpu.memory_space<vmem>>, vector<1x2xf32>
    %c0_23 = arith.constant 0 : index
    %c0_24 = arith.constant 0 : index
    %22 = vector.load %arg12[%c0_23, %c0_24] : memref<16x16xf32, #tpu.memory_space<vmem>>, vector<16x16xf32>
    %c0_25 = arith.constant 0 : index
    %c0_26 = arith.constant 0 : index
    %23 = vector.load %arg13[%c0_25, %c0_26] : memref<16x16xf32, #tpu.memory_space<vmem>>, vector<16x16xf32>
    %c0_27 = arith.constant 0 : index
    %c0_28 = arith.constant 0 : index
    %24 = vector.load %arg14[%c0_27, %c0_28] : memref<1x16xf32, #tpu.memory_space<vmem>>, vector<1x16xf32>
    %25 = vector.extract_strided_slice %8 {offsets = [0, 0], sizes = [8, 1], strides = [1, 1]} : vector<8x2xf32> to vector<8x1xf32>
    %26 = vector.extract_strided_slice %8 {offsets = [0, 0], sizes = [8, 1], strides = [1, 1]} : vector<8x2xf32> to vector<8x1xf32>
    %cst_29 = arith.constant 0.000000e+00 : f32
    %27 = vector.shape_cast %26 : vector<8x1xf32> to vector<8x1xf32>
    %28 = vector.broadcast %27 : vector<8x1xf32> to vector<8x8xf32>
    %29 = vector.broadcast %cst_29 : f32 to vector<8x8xf32>
    %30 = arith.select %14, %28, %29 : vector<8x8xi1>, vector<8x8xf32>
    %cst_30 = arith.constant dense<0.000000e+00> : vector<8xf32>
    %31 = vector.multi_reduction <add>, %30, %cst_30 [0] : vector<8x8xf32> to vector<8xf32>
    %32 = vector.shape_cast %31 : vector<8xf32> to vector<1x8xf32>
    %33 = vector.broadcast %25 : vector<8x1xf32> to vector<8x8xf32>
    %34 = vector.broadcast %32 : vector<1x8xf32> to vector<8x8xf32>
    %35 = arith.subf %33, %34 : vector<8x8xf32>
    %36 = vector.extract_strided_slice %8 {offsets = [0, 1], sizes = [8, 1], strides = [1, 1]} : vector<8x2xf32> to vector<8x1xf32>
    %37 = vector.extract_strided_slice %8 {offsets = [0, 1], sizes = [8, 1], strides = [1, 1]} : vector<8x2xf32> to vector<8x1xf32>
    %cst_31 = arith.constant 0.000000e+00 : f32
    %38 = vector.shape_cast %37 : vector<8x1xf32> to vector<8x1xf32>
    %39 = vector.broadcast %38 : vector<8x1xf32> to vector<8x8xf32>
    %40 = vector.broadcast %cst_31 : f32 to vector<8x8xf32>
    %41 = arith.select %14, %39, %40 : vector<8x8xi1>, vector<8x8xf32>
    %cst_32 = arith.constant dense<0.000000e+00> : vector<8xf32>
    %42 = vector.multi_reduction <add>, %41, %cst_32 [0] : vector<8x8xf32> to vector<8xf32>
    %43 = vector.shape_cast %42 : vector<8xf32> to vector<1x8xf32>
    %44 = vector.broadcast %36 : vector<8x1xf32> to vector<8x8xf32>
    %45 = vector.broadcast %43 : vector<1x8xf32> to vector<8x8xf32>
    %46 = arith.subf %44, %45 : vector<8x8xf32>
    %47 = arith.mulf %35, %35 : vector<8x8xf32>
    %48 = arith.mulf %46, %46 : vector<8x8xf32>
    %49 = arith.addf %47, %48 : vector<8x8xf32>
    %cst_33 = arith.constant 1.000000e+30 : f32
    %50 = vector.broadcast %cst_33 : f32 to vector<8x8xf32>
    %51 = arith.select %11, %49, %50 : vector<8x8xi1>, vector<8x8xf32>
    %cst_34 = arith.constant dense<0.000000e+00> : vector<8x16xf32>
    %52 = tpu.matmul %7, %16, %cst_34 {dimension_numbers = #tpu.dot_dimension_numbers<[1], [0], [0], [1], [0, 0, 1, 1], [], []>} : vector<8x16xf32>, vector<16x16xf32>, vector<8x16xf32> -> vector<8x16xf32>
    %53 = vector.broadcast %19 : vector<1x16xf32> to vector<8x16xf32>
    %54 = arith.addf %52, %53 : vector<8x16xf32>
    %cst_35 = arith.constant 0.000000e+00 : f32
    %55 = vector.broadcast %cst_35 : f32 to vector<8x16xf32>
    %cst_36 = arith.constant 0.000000e+00 : f32
    %56 = vector.broadcast %cst_36 : f32 to vector<8x2xf32>
    %cst_37 = arith.constant dense<0x7F800000> : vector<8xf32>
    %57 = vector.multi_reduction <minimumf>, %51, %cst_37 [1] : vector<8x8xf32> to vector<8xf32>
    %58 = vector.shape_cast %57 : vector<8xf32> to vector<8x1xf32>
    %59 = vector.broadcast %58 : vector<8x1xf32> to vector<8x8xf32>
    %60 = arith.cmpf ole, %51, %59 : vector<8x8xf32>
    %cst_38 = arith.constant 8.000000e+00 : f32
    %61 = vector.broadcast %cst_38 : f32 to vector<8x8xf32>
    %62 = arith.select %60, %15, %61 : vector<8x8xi1>, vector<8x8xf32>
    %cst_39 = arith.constant dense<0x7F800000> : vector<8xf32>
    %63 = vector.multi_reduction <minimumf>, %62, %cst_39 [1] : vector<8x8xf32> to vector<8xf32>
    %64 = vector.shape_cast %63 : vector<8xf32> to vector<8x1xf32>
    %65 = vector.broadcast %64 : vector<8x1xf32> to vector<8x8xf32>
    %66 = arith.cmpf oeq, %15, %65 : vector<8x8xf32>
    %67 = arith.extui %66 : vector<8x8xi1> to vector<8x8xi32>
    %68 = arith.sitofp %67 : vector<8x8xi32> to vector<8x8xf32>
    %cst_40 = arith.constant dense<0.000000e+00> : vector<8x16xf32>
    %69 = tpu.matmul %68, %7, %cst_40 {dimension_numbers = #tpu.dot_dimension_numbers<[1], [0], [0], [1], [0, 0, 1, 1], [], []>} : vector<8x8xf32>, vector<8x16xf32>, vector<8x16xf32> -> vector<8x16xf32>
    %cst_41 = arith.constant dense<0.000000e+00> : vector<8x2xf32>
    %70 = tpu.matmul %68, %8, %cst_41 {dimension_numbers = #tpu.dot_dimension_numbers<[1], [0], [0], [1], [0, 0, 1, 1], [], []>} : vector<8x8xf32>, vector<8x2xf32>, vector<8x2xf32> -> vector<8x2xf32>
    %71 = arith.subf %8, %70 : vector<8x2xf32>
    %72 = arith.mulf %71, %71 : vector<8x2xf32>
    %cst_42 = arith.constant dense<0.000000e+00> : vector<8xf32>
    %73 = vector.multi_reduction <add>, %72, %cst_42 [1] : vector<8x2xf32> to vector<8xf32>
    %74 = vector.shape_cast %73 : vector<8xf32> to vector<8x1xf32>
    %75 = math.sqrt %74 : vector<8x1xf32>
    %cst_43 = arith.constant dense<0.000000e+00> : vector<8x16xf32>
    %76 = tpu.matmul %69, %17, %cst_43 {dimension_numbers = #tpu.dot_dimension_numbers<[1], [0], [0], [1], [0, 0, 1, 1], [], []>} : vector<8x16xf32>, vector<16x16xf32>, vector<8x16xf32> -> vector<8x16xf32>
    %77 = arith.addf %54, %76 : vector<8x16xf32>
    %78 = vector.broadcast %75 : vector<8x1xf32> to vector<8x16xf32>
    %79 = vector.broadcast %18 : vector<1x16xf32> to vector<8x16xf32>
    %80 = arith.mulf %78, %79 : vector<8x16xf32>
    %81 = arith.addf %77, %80 : vector<8x16xf32>
    %cst_44 = arith.constant 0.000000e+00 : f32
    %82 = vector.broadcast %cst_44 : f32 to vector<8x16xf32>
    %83 = arith.maximumf %81, %82 : vector<8x16xf32>
    %cst_45 = arith.constant dense<0.000000e+00> : vector<8x2xf32>
    %84 = tpu.matmul %83, %20, %cst_45 {dimension_numbers = #tpu.dot_dimension_numbers<[1], [0], [0], [1], [0, 0, 1, 1], [], []>} : vector<8x16xf32>, vector<16x2xf32>, vector<8x2xf32> -> vector<8x2xf32>
    %85 = vector.broadcast %21 : vector<1x2xf32> to vector<8x2xf32>
    %86 = arith.addf %84, %85 : vector<8x2xf32>
    %cst_46 = arith.constant 0.000000e+00 : f32
    %87 = vector.broadcast %cst_46 : f32 to vector<8x2xf32>
    %88 = arith.maximumf %86, %87 : vector<8x2xf32>
    %89 = arith.addf %55, %83 : vector<8x16xf32>
    %90 = arith.mulf %71, %88 : vector<8x2xf32>
    %91 = arith.addf %56, %90 : vector<8x2xf32>
    %cst_47 = arith.constant 5.000000e-01 : f32
    %92 = vector.broadcast %cst_47 : f32 to vector<8x8xf32>
    %93 = arith.cmpf ogt, %68, %92 : vector<8x8xf32>
    %cst_48 = arith.constant 1.000000e+30 : f32
    %94 = vector.broadcast %cst_48 : f32 to vector<8x8xf32>
    %95 = arith.select %93, %94, %51 : vector<8x8xi1>, vector<8x8xf32>
    %cst_49 = arith.constant dense<0x7F800000> : vector<8xf32>
    %96 = vector.multi_reduction <minimumf>, %95, %cst_49 [1] : vector<8x8xf32> to vector<8xf32>
    %97 = vector.shape_cast %96 : vector<8xf32> to vector<8x1xf32>
    %98 = vector.broadcast %97 : vector<8x1xf32> to vector<8x8xf32>
    %99 = arith.cmpf ole, %95, %98 : vector<8x8xf32>
    %cst_50 = arith.constant 8.000000e+00 : f32
    %100 = vector.broadcast %cst_50 : f32 to vector<8x8xf32>
    %101 = arith.select %99, %15, %100 : vector<8x8xi1>, vector<8x8xf32>
    %cst_51 = arith.constant dense<0x7F800000> : vector<8xf32>
    %102 = vector.multi_reduction <minimumf>, %101, %cst_51 [1] : vector<8x8xf32> to vector<8xf32>
    %103 = vector.shape_cast %102 : vector<8xf32> to vector<8x1xf32>
    %104 = vector.broadcast %103 : vector<8x1xf32> to vector<8x8xf32>
    %105 = arith.cmpf oeq, %15, %104 : vector<8x8xf32>
    %106 = arith.extui %105 : vector<8x8xi1> to vector<8x8xi32>
    %107 = arith.sitofp %106 : vector<8x8xi32> to vector<8x8xf32>
    %cst_52 = arith.constant dense<0.000000e+00> : vector<8x16xf32>
    %108 = tpu.matmul %107, %7, %cst_52 {dimension_numbers = #tpu.dot_dimension_numbers<[1], [0], [0], [1], [0, 0, 1, 1], [], []>} : vector<8x8xf32>, vector<8x16xf32>, vector<8x16xf32> -> vector<8x16xf32>
    %cst_53 = arith.constant dense<0.000000e+00> : vector<8x2xf32>
    %109 = tpu.matmul %107, %8, %cst_53 {dimension_numbers = #tpu.dot_dimension_numbers<[1], [0], [0], [1], [0, 0, 1, 1], [], []>} : vector<8x8xf32>, vector<8x2xf32>, vector<8x2xf32> -> vector<8x2xf32>
    %110 = arith.subf %8, %109 : vector<8x2xf32>
    %111 = arith.mulf %110, %110 : vector<8x2xf32>
    %cst_54 = arith.constant dense<0.000000e+00> : vector<8xf32>
    %112 = vector.multi_reduction <add>, %111, %cst_54 [1] : vector<8x2xf32> to vector<8xf32>
    %113 = vector.shape_cast %112 : vector<8xf32> to vector<8x1xf32>
    %114 = math.sqrt %113 : vector<8x1xf32>
    %cst_55 = arith.constant dense<0.000000e+00> : vector<8x16xf32>
    %115 = tpu.matmul %108, %17, %cst_55 {dimension_numbers = #tpu.dot_dimension_numbers<[1], [0], [0], [1], [0, 0, 1, 1], [], []>} : vector<8x16xf32>, vector<16x16xf32>, vector<8x16xf32> -> vector<8x16xf32>
    %116 = arith.addf %54, %115 : vector<8x16xf32>
    %117 = vector.broadcast %114 : vector<8x1xf32> to vector<8x16xf32>
    %118 = vector.broadcast %18 : vector<1x16xf32> to vector<8x16xf32>
    %119 = arith.mulf %117, %118 : vector<8x16xf32>
    %120 = arith.addf %116, %119 : vector<8x16xf32>
    %cst_56 = arith.constant 0.000000e+00 : f32
    %121 = vector.broadcast %cst_56 : f32 to vector<8x16xf32>
    %122 = arith.maximumf %120, %121 : vector<8x16xf32>
    %cst_57 = arith.constant dense<0.000000e+00> : vector<8x2xf32>
    %123 = tpu.matmul %122, %20, %cst_57 {dimension_numbers = #tpu.dot_dimension_numbers<[1], [0], [0], [1], [0, 0, 1, 1], [], []>} : vector<8x16xf32>, vector<16x2xf32>, vector<8x2xf32> -> vector<8x2xf32>
    %124 = vector.broadcast %21 : vector<1x2xf32> to vector<8x2xf32>
    %125 = arith.addf %123, %124 : vector<8x2xf32>
    %cst_58 = arith.constant 0.000000e+00 : f32
    %126 = vector.broadcast %cst_58 : f32 to vector<8x2xf32>
    %127 = arith.maximumf %125, %126 : vector<8x2xf32>
    %128 = arith.addf %89, %122 : vector<8x16xf32>
    %129 = arith.mulf %110, %127 : vector<8x2xf32>
    %130 = arith.addf %91, %129 : vector<8x2xf32>
    %cst_59 = arith.constant 5.000000e-01 : f32
    %131 = vector.broadcast %cst_59 : f32 to vector<8x8xf32>
    %132 = arith.cmpf ogt, %107, %131 : vector<8x8xf32>
    %cst_60 = arith.constant 1.000000e+30 : f32
    %133 = vector.broadcast %cst_60 : f32 to vector<8x8xf32>
    %134 = arith.select %132, %133, %95 : vector<8x8xi1>, vector<8x8xf32>
    %cst_61 = arith.constant dense<0x7F800000> : vector<8xf32>
    %135 = vector.multi_reduction <minimumf>, %134, %cst_61 [1] : vector<8x8xf32> to vector<8xf32>
    %136 = vector.shape_cast %135 : vector<8xf32> to vector<8x1xf32>
    %137 = vector.broadcast %136 : vector<8x1xf32> to vector<8x8xf32>
    %138 = arith.cmpf ole, %134, %137 : vector<8x8xf32>
    %cst_62 = arith.constant 8.000000e+00 : f32
    %139 = vector.broadcast %cst_62 : f32 to vector<8x8xf32>
    %140 = arith.select %138, %15, %139 : vector<8x8xi1>, vector<8x8xf32>
    %cst_63 = arith.constant dense<0x7F800000> : vector<8xf32>
    %141 = vector.multi_reduction <minimumf>, %140, %cst_63 [1] : vector<8x8xf32> to vector<8xf32>
    %142 = vector.shape_cast %141 : vector<8xf32> to vector<8x1xf32>
    %143 = vector.broadcast %142 : vector<8x1xf32> to vector<8x8xf32>
    %144 = arith.cmpf oeq, %15, %143 : vector<8x8xf32>
    %145 = arith.extui %144 : vector<8x8xi1> to vector<8x8xi32>
    %146 = arith.sitofp %145 : vector<8x8xi32> to vector<8x8xf32>
    %cst_64 = arith.constant dense<0.000000e+00> : vector<8x16xf32>
    %147 = tpu.matmul %146, %7, %cst_64 {dimension_numbers = #tpu.dot_dimension_numbers<[1], [0], [0], [1], [0, 0, 1, 1], [], []>} : vector<8x8xf32>, vector<8x16xf32>, vector<8x16xf32> -> vector<8x16xf32>
    %cst_65 = arith.constant dense<0.000000e+00> : vector<8x2xf32>
    %148 = tpu.matmul %146, %8, %cst_65 {dimension_numbers = #tpu.dot_dimension_numbers<[1], [0], [0], [1], [0, 0, 1, 1], [], []>} : vector<8x8xf32>, vector<8x2xf32>, vector<8x2xf32> -> vector<8x2xf32>
    %149 = arith.subf %8, %148 : vector<8x2xf32>
    %150 = arith.mulf %149, %149 : vector<8x2xf32>
    %cst_66 = arith.constant dense<0.000000e+00> : vector<8xf32>
    %151 = vector.multi_reduction <add>, %150, %cst_66 [1] : vector<8x2xf32> to vector<8xf32>
    %152 = vector.shape_cast %151 : vector<8xf32> to vector<8x1xf32>
    %153 = math.sqrt %152 : vector<8x1xf32>
    %cst_67 = arith.constant dense<0.000000e+00> : vector<8x16xf32>
    %154 = tpu.matmul %147, %17, %cst_67 {dimension_numbers = #tpu.dot_dimension_numbers<[1], [0], [0], [1], [0, 0, 1, 1], [], []>} : vector<8x16xf32>, vector<16x16xf32>, vector<8x16xf32> -> vector<8x16xf32>
    %155 = arith.addf %54, %154 : vector<8x16xf32>
    %156 = vector.broadcast %153 : vector<8x1xf32> to vector<8x16xf32>
    %157 = vector.broadcast %18 : vector<1x16xf32> to vector<8x16xf32>
    %158 = arith.mulf %156, %157 : vector<8x16xf32>
    %159 = arith.addf %155, %158 : vector<8x16xf32>
    %cst_68 = arith.constant 0.000000e+00 : f32
    %160 = vector.broadcast %cst_68 : f32 to vector<8x16xf32>
    %161 = arith.maximumf %159, %160 : vector<8x16xf32>
    %cst_69 = arith.constant dense<0.000000e+00> : vector<8x2xf32>
    %162 = tpu.matmul %161, %20, %cst_69 {dimension_numbers = #tpu.dot_dimension_numbers<[1], [0], [0], [1], [0, 0, 1, 1], [], []>} : vector<8x16xf32>, vector<16x2xf32>, vector<8x2xf32> -> vector<8x2xf32>
    %163 = vector.broadcast %21 : vector<1x2xf32> to vector<8x2xf32>
    %164 = arith.addf %162, %163 : vector<8x2xf32>
    %cst_70 = arith.constant 0.000000e+00 : f32
    %165 = vector.broadcast %cst_70 : f32 to vector<8x2xf32>
    %166 = arith.maximumf %164, %165 : vector<8x2xf32>
    %167 = arith.addf %128, %161 : vector<8x16xf32>
    %168 = arith.mulf %149, %166 : vector<8x2xf32>
    %169 = arith.addf %130, %168 : vector<8x2xf32>
    %cst_71 = arith.constant 0.333333343 : f32
    %170 = vector.broadcast %cst_71 : f32 to vector<8x2xf32>
    %171 = arith.mulf %169, %170 : vector<8x2xf32>
    %cst_72 = arith.constant dense<0.000000e+00> : vector<8x16xf32>
    %172 = tpu.matmul %7, %22, %cst_72 {dimension_numbers = #tpu.dot_dimension_numbers<[1], [0], [0], [1], [0, 0, 1, 1], [], []>} : vector<8x16xf32>, vector<16x16xf32>, vector<8x16xf32> -> vector<8x16xf32>
    %cst_73 = arith.constant dense<0.000000e+00> : vector<8x16xf32>
    %173 = tpu.matmul %167, %23, %cst_73 {dimension_numbers = #tpu.dot_dimension_numbers<[1], [0], [0], [1], [0, 0, 1, 1], [], []>} : vector<8x16xf32>, vector<16x16xf32>, vector<8x16xf32> -> vector<8x16xf32>
    %174 = arith.addf %172, %173 : vector<8x16xf32>
    %175 = vector.broadcast %24 : vector<1x16xf32> to vector<8x16xf32>
    %176 = arith.addf %174, %175 : vector<8x16xf32>
    %cst_74 = arith.constant 0.000000e+00 : f32
    %177 = vector.broadcast %cst_74 : f32 to vector<8x16xf32>
    %178 = arith.maximumf %176, %177 : vector<8x16xf32>
    %cst_75 = arith.constant dense<0.000000e+00> : vector<16xf32>
    %179 = vector.multi_reduction <add>, %178, %cst_75 [0] : vector<8x16xf32> to vector<16xf32>
    %180 = vector.shape_cast %179 : vector<16xf32> to vector<1x16xf32>
    %cst_76 = arith.constant 8.000000e+00 : f32
    %181 = vector.broadcast %cst_76 : f32 to vector<1x16xf32>
    %182 = arith.divf %180, %181 : vector<1x16xf32>
    %183 = vector.broadcast %182 : vector<1x16xf32> to vector<8x16xf32>
    %184 = arith.subf %178, %183 : vector<8x16xf32>
    %185 = arith.mulf %184, %184 : vector<8x16xf32>
    %cst_77 = arith.constant dense<0.000000e+00> : vector<8xf32>
    %186 = vector.multi_reduction <add>, %185, %cst_77 [1] : vector<8x16xf32> to vector<8xf32>
    %187 = vector.shape_cast %186 : vector<8xf32> to vector<8x1xf32>
    %188 = vector.shape_cast %187 : vector<8x1xf32> to vector<1x8x1xf32>
    %cst_78 = arith.constant dense<0.000000e+00> : vector<1xf32>
    %189 = vector.multi_reduction <add>, %188, %cst_78 [1, 2] : vector<1x8x1xf32> to vector<1xf32>
    %190 = vector.shape_cast %189 : vector<1xf32> to vector<1x1x1xf32>
    %191 = vector.extract %190[0, 0, 0] : f32 from vector<1x1x1xf32>
    %cst_79 = arith.constant 8.000000e+00 : f32
    %192 = arith.divf %191, %cst_79 : f32
    %cst_80 = arith.constant 9.99999997E-7 : f32
    %193 = arith.addf %cst_80, %192 : f32
    %194 = math.sqrt %193 : f32
    %195 = vector.broadcast %194 : f32 to vector<8x16xf32>
    %196 = arith.divf %184, %195 : vector<8x16xf32>
    %197 = arith.addf %8, %171 : vector<8x2xf32>
    %c0_81 = arith.constant 0 : index
    %c0_82 = arith.constant 0 : index
    %198 = vector.load %arg15[%c0_81, %c0_82] : memref<16x16xf32, #tpu.memory_space<vmem>>, vector<16x16xf32>
    %c0_83 = arith.constant 0 : index
    %c0_84 = arith.constant 0 : index
    %199 = vector.load %arg16[%c0_83, %c0_84] : memref<16x16xf32, #tpu.memory_space<vmem>>, vector<16x16xf32>
    %c0_85 = arith.constant 0 : index
    %c0_86 = arith.constant 0 : index
    %200 = vector.load %arg17[%c0_85, %c0_86] : memref<1x16xf32, #tpu.memory_space<vmem>>, vector<1x16xf32>
    %c0_87 = arith.constant 0 : index
    %c0_88 = arith.constant 0 : index
    %201 = vector.load %arg18[%c0_87, %c0_88] : memref<1x16xf32, #tpu.memory_space<vmem>>, vector<1x16xf32>
    %c0_89 = arith.constant 0 : index
    %c0_90 = arith.constant 0 : index
    %202 = vector.load %arg21[%c0_89, %c0_90] : memref<16x16xf32, #tpu.memory_space<vmem>>, vector<16x16xf32>
    %c0_91 = arith.constant 0 : index
    %c0_92 = arith.constant 0 : index
    %203 = vector.load %arg22[%c0_91, %c0_92] : memref<16x16xf32, #tpu.memory_space<vmem>>, vector<16x16xf32>
    %c0_93 = arith.constant 0 : index
    %c0_94 = arith.constant 0 : index
    %204 = vector.load %arg23[%c0_93, %c0_94] : memref<1x16xf32, #tpu.memory_space<vmem>>, vector<1x16xf32>
    %205 = vector.extract_strided_slice %197 {offsets = [0, 0], sizes = [8, 1], strides = [1, 1]} : vector<8x2xf32> to vector<8x1xf32>
    %206 = vector.extract_strided_slice %197 {offsets = [0, 0], sizes = [8, 1], strides = [1, 1]} : vector<8x2xf32> to vector<8x1xf32>
    %cst_95 = arith.constant 0.000000e+00 : f32
    %207 = vector.shape_cast %206 : vector<8x1xf32> to vector<8x1xf32>
    %208 = vector.broadcast %207 : vector<8x1xf32> to vector<8x8xf32>
    %209 = vector.broadcast %cst_95 : f32 to vector<8x8xf32>
    %210 = arith.select %14, %208, %209 : vector<8x8xi1>, vector<8x8xf32>
    %cst_96 = arith.constant dense<0.000000e+00> : vector<8xf32>
    %211 = vector.multi_reduction <add>, %210, %cst_96 [0] : vector<8x8xf32> to vector<8xf32>
    %212 = vector.shape_cast %211 : vector<8xf32> to vector<1x8xf32>
    %213 = vector.broadcast %205 : vector<8x1xf32> to vector<8x8xf32>
    %214 = vector.broadcast %212 : vector<1x8xf32> to vector<8x8xf32>
    %215 = arith.subf %213, %214 : vector<8x8xf32>
    %216 = vector.extract_strided_slice %197 {offsets = [0, 1], sizes = [8, 1], strides = [1, 1]} : vector<8x2xf32> to vector<8x1xf32>
    %217 = vector.extract_strided_slice %197 {offsets = [0, 1], sizes = [8, 1], strides = [1, 1]} : vector<8x2xf32> to vector<8x1xf32>
    %cst_97 = arith.constant 0.000000e+00 : f32
    %218 = vector.shape_cast %217 : vector<8x1xf32> to vector<8x1xf32>
    %219 = vector.broadcast %218 : vector<8x1xf32> to vector<8x8xf32>
    %220 = vector.broadcast %cst_97 : f32 to vector<8x8xf32>
    %221 = arith.select %14, %219, %220 : vector<8x8xi1>, vector<8x8xf32>
    %cst_98 = arith.constant dense<0.000000e+00> : vector<8xf32>
    %222 = vector.multi_reduction <add>, %221, %cst_98 [0] : vector<8x8xf32> to vector<8xf32>
    %223 = vector.shape_cast %222 : vector<8xf32> to vector<1x8xf32>
    %224 = vector.broadcast %216 : vector<8x1xf32> to vector<8x8xf32>
    %225 = vector.broadcast %223 : vector<1x8xf32> to vector<8x8xf32>
    %226 = arith.subf %224, %225 : vector<8x8xf32>
    %227 = arith.mulf %215, %215 : vector<8x8xf32>
    %228 = arith.mulf %226, %226 : vector<8x8xf32>
    %229 = arith.addf %227, %228 : vector<8x8xf32>
    %cst_99 = arith.constant 1.000000e+30 : f32
    %230 = vector.broadcast %cst_99 : f32 to vector<8x8xf32>
    %231 = arith.select %11, %229, %230 : vector<8x8xi1>, vector<8x8xf32>
    %cst_100 = arith.constant dense<0.000000e+00> : vector<8x16xf32>
    %232 = tpu.matmul %196, %198, %cst_100 {dimension_numbers = #tpu.dot_dimension_numbers<[1], [0], [0], [1], [0, 0, 1, 1], [], []>} : vector<8x16xf32>, vector<16x16xf32>, vector<8x16xf32> -> vector<8x16xf32>
    %233 = vector.broadcast %201 : vector<1x16xf32> to vector<8x16xf32>
    %234 = arith.addf %232, %233 : vector<8x16xf32>
    %cst_101 = arith.constant 0.000000e+00 : f32
    %235 = vector.broadcast %cst_101 : f32 to vector<8x16xf32>
    %cst_102 = arith.constant dense<0x7F800000> : vector<8xf32>
    %236 = vector.multi_reduction <minimumf>, %231, %cst_102 [1] : vector<8x8xf32> to vector<8xf32>
    %237 = vector.shape_cast %236 : vector<8xf32> to vector<8x1xf32>
    %238 = vector.broadcast %237 : vector<8x1xf32> to vector<8x8xf32>
    %239 = arith.cmpf ole, %231, %238 : vector<8x8xf32>
    %cst_103 = arith.constant 8.000000e+00 : f32
    %240 = vector.broadcast %cst_103 : f32 to vector<8x8xf32>
    %241 = arith.select %239, %15, %240 : vector<8x8xi1>, vector<8x8xf32>
    %cst_104 = arith.constant dense<0x7F800000> : vector<8xf32>
    %242 = vector.multi_reduction <minimumf>, %241, %cst_104 [1] : vector<8x8xf32> to vector<8xf32>
    %243 = vector.shape_cast %242 : vector<8xf32> to vector<8x1xf32>
    %244 = vector.broadcast %243 : vector<8x1xf32> to vector<8x8xf32>
    %245 = arith.cmpf oeq, %15, %244 : vector<8x8xf32>
    %246 = arith.extui %245 : vector<8x8xi1> to vector<8x8xi32>
    %247 = arith.sitofp %246 : vector<8x8xi32> to vector<8x8xf32>
    %cst_105 = arith.constant dense<0.000000e+00> : vector<8x16xf32>
    %248 = tpu.matmul %247, %196, %cst_105 {dimension_numbers = #tpu.dot_dimension_numbers<[1], [0], [0], [1], [0, 0, 1, 1], [], []>} : vector<8x8xf32>, vector<8x16xf32>, vector<8x16xf32> -> vector<8x16xf32>
    %cst_106 = arith.constant dense<0.000000e+00> : vector<8x2xf32>
    %249 = tpu.matmul %247, %197, %cst_106 {dimension_numbers = #tpu.dot_dimension_numbers<[1], [0], [0], [1], [0, 0, 1, 1], [], []>} : vector<8x8xf32>, vector<8x2xf32>, vector<8x2xf32> -> vector<8x2xf32>
    %250 = arith.subf %197, %249 : vector<8x2xf32>
    %251 = arith.mulf %250, %250 : vector<8x2xf32>
    %cst_107 = arith.constant dense<0.000000e+00> : vector<8xf32>
    %252 = vector.multi_reduction <add>, %251, %cst_107 [1] : vector<8x2xf32> to vector<8xf32>
    %253 = vector.shape_cast %252 : vector<8xf32> to vector<8x1xf32>
    %254 = math.sqrt %253 : vector<8x1xf32>
    %cst_108 = arith.constant dense<0.000000e+00> : vector<8x16xf32>
    %255 = tpu.matmul %248, %199, %cst_108 {dimension_numbers = #tpu.dot_dimension_numbers<[1], [0], [0], [1], [0, 0, 1, 1], [], []>} : vector<8x16xf32>, vector<16x16xf32>, vector<8x16xf32> -> vector<8x16xf32>
    %256 = arith.addf %234, %255 : vector<8x16xf32>
    %257 = vector.broadcast %254 : vector<8x1xf32> to vector<8x16xf32>
    %258 = vector.broadcast %200 : vector<1x16xf32> to vector<8x16xf32>
    %259 = arith.mulf %257, %258 : vector<8x16xf32>
    %260 = arith.addf %256, %259 : vector<8x16xf32>
    %cst_109 = arith.constant 0.000000e+00 : f32
    %261 = vector.broadcast %cst_109 : f32 to vector<8x16xf32>
    %262 = arith.maximumf %260, %261 : vector<8x16xf32>
    %263 = arith.addf %235, %262 : vector<8x16xf32>
    %cst_110 = arith.constant 5.000000e-01 : f32
    %264 = vector.broadcast %cst_110 : f32 to vector<8x8xf32>
    %265 = arith.cmpf ogt, %247, %264 : vector<8x8xf32>
    %cst_111 = arith.constant 1.000000e+30 : f32
    %266 = vector.broadcast %cst_111 : f32 to vector<8x8xf32>
    %267 = arith.select %265, %266, %231 : vector<8x8xi1>, vector<8x8xf32>
    %cst_112 = arith.constant dense<0x7F800000> : vector<8xf32>
    %268 = vector.multi_reduction <minimumf>, %267, %cst_112 [1] : vector<8x8xf32> to vector<8xf32>
    %269 = vector.shape_cast %268 : vector<8xf32> to vector<8x1xf32>
    %270 = vector.broadcast %269 : vector<8x1xf32> to vector<8x8xf32>
    %271 = arith.cmpf ole, %267, %270 : vector<8x8xf32>
    %cst_113 = arith.constant 8.000000e+00 : f32
    %272 = vector.broadcast %cst_113 : f32 to vector<8x8xf32>
    %273 = arith.select %271, %15, %272 : vector<8x8xi1>, vector<8x8xf32>
    %cst_114 = arith.constant dense<0x7F800000> : vector<8xf32>
    %274 = vector.multi_reduction <minimumf>, %273, %cst_114 [1] : vector<8x8xf32> to vector<8xf32>
    %275 = vector.shape_cast %274 : vector<8xf32> to vector<8x1xf32>
    %276 = vector.broadcast %275 : vector<8x1xf32> to vector<8x8xf32>
    %277 = arith.cmpf oeq, %15, %276 : vector<8x8xf32>
    %278 = arith.extui %277 : vector<8x8xi1> to vector<8x8xi32>
    %279 = arith.sitofp %278 : vector<8x8xi32> to vector<8x8xf32>
    %cst_115 = arith.constant dense<0.000000e+00> : vector<8x16xf32>
    %280 = tpu.matmul %279, %196, %cst_115 {dimension_numbers = #tpu.dot_dimension_numbers<[1], [0], [0], [1], [0, 0, 1, 1], [], []>} : vector<8x8xf32>, vector<8x16xf32>, vector<8x16xf32> -> vector<8x16xf32>
    %cst_116 = arith.constant dense<0.000000e+00> : vector<8x2xf32>
    %281 = tpu.matmul %279, %197, %cst_116 {dimension_numbers = #tpu.dot_dimension_numbers<[1], [0], [0], [1], [0, 0, 1, 1], [], []>} : vector<8x8xf32>, vector<8x2xf32>, vector<8x2xf32> -> vector<8x2xf32>
    %282 = arith.subf %197, %281 : vector<8x2xf32>
    %283 = arith.mulf %282, %282 : vector<8x2xf32>
    %cst_117 = arith.constant dense<0.000000e+00> : vector<8xf32>
    %284 = vector.multi_reduction <add>, %283, %cst_117 [1] : vector<8x2xf32> to vector<8xf32>
    %285 = vector.shape_cast %284 : vector<8xf32> to vector<8x1xf32>
    %286 = math.sqrt %285 : vector<8x1xf32>
    %cst_118 = arith.constant dense<0.000000e+00> : vector<8x16xf32>
    %287 = tpu.matmul %280, %199, %cst_118 {dimension_numbers = #tpu.dot_dimension_numbers<[1], [0], [0], [1], [0, 0, 1, 1], [], []>} : vector<8x16xf32>, vector<16x16xf32>, vector<8x16xf32> -> vector<8x16xf32>
    %288 = arith.addf %234, %287 : vector<8x16xf32>
    %289 = vector.broadcast %286 : vector<8x1xf32> to vector<8x16xf32>
    %290 = vector.broadcast %200 : vector<1x16xf32> to vector<8x16xf32>
    %291 = arith.mulf %289, %290 : vector<8x16xf32>
    %292 = arith.addf %288, %291 : vector<8x16xf32>
    %cst_119 = arith.constant 0.000000e+00 : f32
    %293 = vector.broadcast %cst_119 : f32 to vector<8x16xf32>
    %294 = arith.maximumf %292, %293 : vector<8x16xf32>
    %295 = arith.addf %263, %294 : vector<8x16xf32>
    %cst_120 = arith.constant 5.000000e-01 : f32
    %296 = vector.broadcast %cst_120 : f32 to vector<8x8xf32>
    %297 = arith.cmpf ogt, %279, %296 : vector<8x8xf32>
    %cst_121 = arith.constant 1.000000e+30 : f32
    %298 = vector.broadcast %cst_121 : f32 to vector<8x8xf32>
    %299 = arith.select %297, %298, %267 : vector<8x8xi1>, vector<8x8xf32>
    %cst_122 = arith.constant dense<0x7F800000> : vector<8xf32>
    %300 = vector.multi_reduction <minimumf>, %299, %cst_122 [1] : vector<8x8xf32> to vector<8xf32>
    %301 = vector.shape_cast %300 : vector<8xf32> to vector<8x1xf32>
    %302 = vector.broadcast %301 : vector<8x1xf32> to vector<8x8xf32>
    %303 = arith.cmpf ole, %299, %302 : vector<8x8xf32>
    %cst_123 = arith.constant 8.000000e+00 : f32
    %304 = vector.broadcast %cst_123 : f32 to vector<8x8xf32>
    %305 = arith.select %303, %15, %304 : vector<8x8xi1>, vector<8x8xf32>
    %cst_124 = arith.constant dense<0x7F800000> : vector<8xf32>
    %306 = vector.multi_reduction <minimumf>, %305, %cst_124 [1] : vector<8x8xf32> to vector<8xf32>
    %307 = vector.shape_cast %306 : vector<8xf32> to vector<8x1xf32>
    %308 = vector.broadcast %307 : vector<8x1xf32> to vector<8x8xf32>
    %309 = arith.cmpf oeq, %15, %308 : vector<8x8xf32>
    %310 = arith.extui %309 : vector<8x8xi1> to vector<8x8xi32>
    %311 = arith.sitofp %310 : vector<8x8xi32> to vector<8x8xf32>
    %cst_125 = arith.constant dense<0.000000e+00> : vector<8x16xf32>
    %312 = tpu.matmul %311, %196, %cst_125 {dimension_numbers = #tpu.dot_dimension_numbers<[1], [0], [0], [1], [0, 0, 1, 1], [], []>} : vector<8x8xf32>, vector<8x16xf32>, vector<8x16xf32> -> vector<8x16xf32>
    %cst_126 = arith.constant dense<0.000000e+00> : vector<8x2xf32>
    %313 = tpu.matmul %311, %197, %cst_126 {dimension_numbers = #tpu.dot_dimension_numbers<[1], [0], [0], [1], [0, 0, 1, 1], [], []>} : vector<8x8xf32>, vector<8x2xf32>, vector<8x2xf32> -> vector<8x2xf32>
    %314 = arith.subf %197, %313 : vector<8x2xf32>
    %315 = arith.mulf %314, %314 : vector<8x2xf32>
    %cst_127 = arith.constant dense<0.000000e+00> : vector<8xf32>
    %316 = vector.multi_reduction <add>, %315, %cst_127 [1] : vector<8x2xf32> to vector<8xf32>
    %317 = vector.shape_cast %316 : vector<8xf32> to vector<8x1xf32>
    %318 = math.sqrt %317 : vector<8x1xf32>
    %cst_128 = arith.constant dense<0.000000e+00> : vector<8x16xf32>
    %319 = tpu.matmul %312, %199, %cst_128 {dimension_numbers = #tpu.dot_dimension_numbers<[1], [0], [0], [1], [0, 0, 1, 1], [], []>} : vector<8x16xf32>, vector<16x16xf32>, vector<8x16xf32> -> vector<8x16xf32>
    %320 = arith.addf %234, %319 : vector<8x16xf32>
    %321 = vector.broadcast %318 : vector<8x1xf32> to vector<8x16xf32>
    %322 = vector.broadcast %200 : vector<1x16xf32> to vector<8x16xf32>
    %323 = arith.mulf %321, %322 : vector<8x16xf32>
    %324 = arith.addf %320, %323 : vector<8x16xf32>
    %cst_129 = arith.constant 0.000000e+00 : f32
    %325 = vector.broadcast %cst_129 : f32 to vector<8x16xf32>
    %326 = arith.maximumf %324, %325 : vector<8x16xf32>
    %327 = arith.addf %295, %326 : vector<8x16xf32>
    %cst_130 = arith.constant dense<0.000000e+00> : vector<8x16xf32>
    %328 = tpu.matmul %196, %202, %cst_130 {dimension_numbers = #tpu.dot_dimension_numbers<[1], [0], [0], [1], [0, 0, 1, 1], [], []>} : vector<8x16xf32>, vector<16x16xf32>, vector<8x16xf32> -> vector<8x16xf32>
    %cst_131 = arith.constant dense<0.000000e+00> : vector<8x16xf32>
    %329 = tpu.matmul %327, %203, %cst_131 {dimension_numbers = #tpu.dot_dimension_numbers<[1], [0], [0], [1], [0, 0, 1, 1], [], []>} : vector<8x16xf32>, vector<16x16xf32>, vector<8x16xf32> -> vector<8x16xf32>
    %330 = arith.addf %328, %329 : vector<8x16xf32>
    %331 = vector.broadcast %204 : vector<1x16xf32> to vector<8x16xf32>
    %332 = arith.addf %330, %331 : vector<8x16xf32>
    %cst_132 = arith.constant 0.000000e+00 : f32
    %333 = vector.broadcast %cst_132 : f32 to vector<8x16xf32>
    %334 = arith.maximumf %332, %333 : vector<8x16xf32>
    %cst_133 = arith.constant dense<0.000000e+00> : vector<16xf32>
    %335 = vector.multi_reduction <add>, %334, %cst_133 [0] : vector<8x16xf32> to vector<16xf32>
    %336 = vector.shape_cast %335 : vector<16xf32> to vector<1x16xf32>
    %cst_134 = arith.constant 8.000000e+00 : f32
    %337 = vector.broadcast %cst_134 : f32 to vector<1x16xf32>
    %338 = arith.divf %336, %337 : vector<1x16xf32>
    %339 = vector.broadcast %338 : vector<1x16xf32> to vector<8x16xf32>
    %340 = arith.subf %334, %339 : vector<8x16xf32>
    %341 = arith.mulf %340, %340 : vector<8x16xf32>
    %cst_135 = arith.constant dense<0.000000e+00> : vector<8xf32>
    %342 = vector.multi_reduction <add>, %341, %cst_135 [1] : vector<8x16xf32> to vector<8xf32>
    %343 = vector.shape_cast %342 : vector<8xf32> to vector<8x1xf32>
    %344 = vector.shape_cast %343 : vector<8x1xf32> to vector<1x8x1xf32>
    %cst_136 = arith.constant dense<0.000000e+00> : vector<1xf32>
    %345 = vector.multi_reduction <add>, %344, %cst_136 [1, 2] : vector<1x8x1xf32> to vector<1xf32>
    %346 = vector.shape_cast %345 : vector<1xf32> to vector<1x1x1xf32>
    %347 = vector.extract %346[0, 0, 0] : f32 from vector<1x1x1xf32>
    %cst_137 = arith.constant 8.000000e+00 : f32
    %348 = arith.divf %347, %cst_137 : f32
    %cst_138 = arith.constant 9.99999997E-7 : f32
    %349 = arith.addf %cst_138, %348 : f32
    %350 = math.sqrt %349 : f32
    %351 = vector.broadcast %350 : f32 to vector<8x16xf32>
    %352 = arith.divf %340, %351 : vector<8x16xf32>
    %c0_139 = arith.constant 0 : index
    %c0_140 = arith.constant 0 : index
    %353 = vector.load %arg3[%c0_139, %c0_140] : memref<8x1xf32, #tpu.memory_space<vmem>>, vector<8x1xf32>
    %cst_141 = arith.constant 1.000000e+00 : f32
    %354 = vector.broadcast %cst_141 : f32 to vector<8x1xf32>
    %355 = arith.subf %353, %354 : vector<8x1xf32>
    %cst_142 = arith.constant 1.000000e+30 : f32
    %356 = vector.broadcast %cst_142 : f32 to vector<8x1xf32>
    %357 = arith.mulf %355, %356 : vector<8x1xf32>
    %358 = vector.broadcast %357 : vector<8x1xf32> to vector<8x16xf32>
    %359 = arith.addf %352, %358 : vector<8x16xf32>
    %cst_143 = arith.constant dense<0xFF800000> : vector<16xf32>
    %360 = vector.multi_reduction <maximumf>, %359, %cst_143 [0] : vector<8x16xf32> to vector<16xf32>
    %361 = vector.shape_cast %360 : vector<16xf32> to vector<1x16xf32>
    %c0_144 = arith.constant 0 : index
    %c0_145 = arith.constant 0 : index
    %362 = vector.load %arg24[%c0_144, %c0_145] : memref<16x16xf32, #tpu.memory_space<vmem>>, vector<16x16xf32>
    %cst_146 = arith.constant dense<0.000000e+00> : vector<1x16xf32>
    %363 = tpu.matmul %361, %362, %cst_146 {dimension_numbers = #tpu.dot_dimension_numbers<[1], [0], [0], [1], [0, 0, 1, 1], [], []>} : vector<1x16xf32>, vector<16x16xf32>, vector<1x16xf32> -> vector<1x16xf32>
    %c0_147 = arith.constant 0 : index
    %c0_148 = arith.constant 0 : index
    %364 = vector.load %arg25[%c0_147, %c0_148] : memref<1x16xf32, #tpu.memory_space<vmem>>, vector<1x16xf32>
    %365 = arith.addf %363, %364 : vector<1x16xf32>
    %cst_149 = arith.constant 0.000000e+00 : f32
    %366 = vector.broadcast %cst_149 : f32 to vector<1x16xf32>
    %367 = arith.maximumf %365, %366 : vector<1x16xf32>
    %c0_150 = arith.constant 0 : index
    %c0_151 = arith.constant 0 : index
    %368 = vector.load %arg26[%c0_150, %c0_151] : memref<16x128xf32, #tpu.memory_space<vmem>>, vector<16x128xf32>
    %cst_152 = arith.constant dense<0.000000e+00> : vector<1x128xf32>
    %369 = tpu.matmul %367, %368, %cst_152 {dimension_numbers = #tpu.dot_dimension_numbers<[1], [0], [0], [1], [0, 0, 1, 1], [], []>} : vector<1x16xf32>, vector<16x128xf32>, vector<1x128xf32> -> vector<1x128xf32>
    %c0_153 = arith.constant 0 : index
    %c0_154 = arith.constant 0 : index
    %370 = vector.load %arg27[%c0_153, %c0_154] : memref<1x128xf32, #tpu.memory_space<vmem>>, vector<1x128xf32>
    %371 = arith.addf %369, %370 : vector<1x128xf32>
    %c0_155 = arith.constant 0 : index
    %c0_156 = arith.constant 0 : index
    %372 = vector.load %arg28[%c0_155, %c0_156] : memref<1x128xf32, #tpu.memory_space<vmem>>, vector<1x128xf32>
    tpu.vector_store %arg28[%c0_155, %c0_156], %371 {strides = array<i32>} : memref<1x128xf32, #tpu.memory_space<vmem>>, vector<1x128xf32>,
    return
  }
}

</mosaic_0001>

<bundles_post_ra>
// kernel: mp_ge_forward.1
= control target key start
LH: loop header
LB: loop body
LE: loop exit
PB: predicated region body
PF: predicated region fallthrough
CT: control target
= control target key end

     0   :  { %s4307_s0 = inlined_call_operand.vmem [shape: f32[8,5], index: 0, kind: input, shape index: {}]   ;;  %s4308_s1 = inlined_call_operand.vmem [shape: f32[8,2], index: 1, kind: input, shape index: {}]   ;;  %s4309_s2 = inlined_call_operand.vmem [shape: f32[8,8], index: 2, kind: input, shape index: {}]   ;;  %s4310_s3 = inlined_call_operand.vmem [shape: f32[8,1], index: 3, kind: input, shape index: {}]   ;;  %s4311_s4 = inlined_call_operand.hbm [shape: f32[5,16], index: 4, kind: input, shape index: {}]   ;;  %s4312_s5 = inlined_call_operand.hbm [shape: f32[1,16], index: 5, kind: input, shape index: {}]   ;;  %s4313_s6 = inlined_call_operand.vmem [shape: f32[16,16], index: 6, kind: input, shape index: {}]   ;;  %s4314_s7 = inlined_call_operand.vmem [shape: f32[16,16], index: 7, kind: input, shape index: {}]   ;;  %s4315_s8 = inlined_call_operand.hbm [shape: f32[1,16], index: 8, kind: input, shape index: {}]   ;;  %s4316_s9 = inlined_call_operand.hbm [shape: f32[1,16], index: 9, kind: input, shape index: {}]   ;;  %s4317_s10 = inlined_call_operand.vmem [shape: f32[16,2], index: 10, kind: input, shape index: {}]   ;;  %s4318_s11 = inlined_call_operand.hbm [shape: f32[1,2], index: 11, kind: input, shape index: {}]   ;;  %s4319_s12 = inlined_call_operand.vmem [shape: f32[16,16], index: 12, kind: input, shape index: {}]   ;;  %s4320_s13 = inlined_call_operand.vmem [shape: f32[16,16], index: 13, kind: input, shape index: {}]   ;;  %s4321_s14 = inlined_call_operand.hbm [shape: f32[1,16], index: 14, kind: input, shape index: {}]   ;;  %s4322_s15 = inlined_call_operand.vmem [shape: f32[16,16], index: 15, kind: input, shape index: {}]   ;;  %s4323_s16 = inlined_call_operand.vmem [shape: f32[16,16], index: 16, kind: input, shape index: {}]   ;;  %s4324_s17 = inlined_call_operand.hbm [shape: f32[1,16], index: 17, kind: input, shape index: {}]   ;;  %s4325_s18 = inlined_call_operand.hbm [shape: f32[1,16], index: 18, kind: input, shape index: {}]   ;;  %s4326_s19 = inlined_call_operand.vmem [shape: f32[16,2], index: 19, kind: input, shape index: {}]   ;;  %s4327_s20 = inlined_call_operand.hbm [shape: f32[1,2], index: 20, kind: input, shape index: {}]   ;;  %s4328_s21 = inlined_call_operand.vmem [shape: f32[16,16], index: 21, kind: input, shape index: {}]   ;;  %s4329_s22 = inlined_call_operand.vmem [shape: f32[16,16], index: 22, kind: input, shape index: {}]   ;;  %s4330_s23 = inlined_call_operand.hbm [shape: f32[1,16], index: 23, kind: input, shape index: {}]   ;;  %s4331_s24 = inlined_call_operand.vmem [shape: f32[16,16], index: 24, kind: input, shape index: {}]   ;;  %s4332_s25 = inlined_call_operand.hbm [shape: f32[1,16], index: 25, kind: input, shape index: {}]   ;;  %s4333_s26 = inlined_call_operand.hbm [shape: f32[16,128], index: 26, kind: input, shape index: {}]   ;;  %s4334_s27 = inlined_call_operand.hbm [shape: f32[1,128], index: 27, kind: input, shape index: {}]   ;;  %s4335_s28 = inlined_call_operand.hbm [shape: f32[1,128], index: 28, kind: output, shape index: {}]  }
   0x1   :  { %4345 = sst [smem:[#allocation32_spill]] %s4307_s0 }
   0x2   :  { %4346 = sst [smem:[#allocation33_spill]] %s4308_s1 }
   0x3   :  { %4347 = sst [smem:[#allocation34_spill]] %s4309_s2 }
   0x4   :  { %4348 = sst [smem:[#allocation35_spill]] %s4310_s3 }
   0x5   :  { %4349 = sst [smem:[#allocation36_spill]] %s4311_s4 }
   0x6   :  { %4350 = sst [smem:[#allocation37_spill]] %s4312_s5 }
   0x7   :  { %4351 = sst [smem:[#allocation38_spill]] %s4313_s6 }
   0x8   :  { %4352 = sst [smem:[#allocation39_spill]] %s4314_s7 }
   0x9   :  { %4353 = sst [smem:[#allocation40_spill]] %s4315_s8 }
   0xa   :  { %4354 = sst [smem:[#allocation41_spill]] %s4316_s9 }
   0xb   :  { %4355 = sst [smem:[#allocation42_spill]] %s4317_s10 }
   0xc   :  { %4356 = sst [smem:[#allocation43_spill]] %s4318_s11 }
   0xd   :  { %4357 = sst [smem:[#allocation44_spill]] %s4319_s12 }
   0xe   :  { %33 = vsyncpa [#allocation3], 0 }
   0xf   :  { %34 = vsyncpa [#allocation6], 0 }
  0x10   :  { %35 = vsyncpa [#allocation9], 0 }
  0x11   :  { %36 = vsyncpa [#allocation12], 0 }
  0x12   :  { %37 = vsyncpa [#allocation15], 0 }
  0x13   :  { %38 = vsyncpa [#allocation18], 0 }
  0x14   :  { %39 = vsyncpa [#allocation21], 0 }
  0x15   :  { %40 = vsyncpa [#allocation4], 0  ;;  %s3615_s4 = smov [#allocation5]   ;;  %s3616_s5 = smov [#allocation8]  }
  0x16   :  { %s65_s8 = sshll.u32 %s3615_s4, 4  ;;  %s89_s9 = sshll.u32 %s3616_s5, 4  ;;  %s66_s8 = int_to_ptr.vmem [resolvable:$true] %s65_s8  ;;  %s90_s9 = int_to_ptr.vmem [resolvable:$true] %s89_s9 }
  0x17   :  { %s4358_s6 = sld [smem:[#allocation37_spill]] }
  0x1d   :  { %s3291_s10 = scalar_lea.hbm %s4358_s6, 16 }
  0x1e   :  { %p3292_p0 = scmp.ne.s32.totalorder %s4358_s6, %s3291_s10  ;;  %p3295_p1 = scmp.lt.u32.totalorder %s3291_s10, %s4358_s6 }
  0x20   :  { %p3297_p2 = pnand %p3295_p1, %p3292_p0 }
  0x22   :  { %3300 = shalt.err (!%p3297_p2)
}
  0x23   :  { %s3301_s2 = scalar_lea.vmem %s66_s8, 16  ;;  %s3305_s12 = scalar_lea.vmem %s66_s8, 32 }
  0x24   :  { %p3302_p3 = scmp.ne.s32.totalorder %s66_s8, %s3301_s2  ;;  %p3306_p4 = scmp.lt.s32.totalorder %s66_s8, %s66_s8 }
  0x25   :  { %p3307_p5 = scmp.lt.s32.totalorder %s3305_s12, %s3301_s2 }
  0x27   :  { %p3308_p6 = por %p3307_p5, %p3306_p4 }
  0x29   :  { %p3309_p7 = pnand %p3308_p6, %p3302_p3 }
  0x2b   :  { %3312 = shalt.err (!%p3309_p7)
}
  0x2c   :  { %68 = dma.hbm_to_vmem [thread:$0]  %s4358_s6, 16, %s66_s8, [#allocation6]  }
  0x2d   :  { %s4359_s30 = sld [smem:[#allocation41_spill]] }
  0x33   :  { %s3313_s3 = scalar_lea.hbm %s4359_s30, 16 }
  0x34   :  { %p3314_p8 = scmp.ne.s32.totalorder %s4359_s30, %s3313_s3  ;;  %p3317_p9 = scmp.lt.u32.totalorder %s3313_s3, %s4359_s30 }
  0x36   :  { %p3319_p10 = pnand %p3317_p9, %p3314_p8 }
  0x38   :  { %3322 = shalt.err (!%p3319_p10)
}
  0x39   :  { %s3323_s19 = scalar_lea.vmem %s90_s9, 16  ;;  %s3327_s2 = scalar_lea.vmem %s90_s9, 32 }
  0x3a   :  { %p3324_p11 = scmp.ne.s32.totalorder %s90_s9, %s3323_s19  ;;  %p3328_p12 = scmp.lt.s32.totalorder %s90_s9, %s90_s9 }
  0x3b   :  { %p3329_p13 = scmp.lt.s32.totalorder %s3327_s2, %s3323_s19 }
  0x3d   :  { %p3330_p0 = por %p3329_p13, %p3328_p12 }
  0x3f   :  { %p3331_p1 = pnand %p3330_p0, %p3324_p11 }
  0x41   :  { %3334 = shalt.err (!%p3331_p1)
}
  0x42   :  { %92 = dma.hbm_to_vmem [thread:$0]  %s4359_s30, 16, %s90_s9, [#allocation9]  }
  0x43   :  { %s3617_s12 = smov [#allocation11]   ;;  %s3618_s1 = smov [#allocation14]  }
  0x44   :  { %s115_s7 = sshll.u32 %s3617_s12, 4  ;;  %s139_s4 = sshll.u32 %s3618_s1, 4  ;;  %s116_s7 = int_to_ptr.vmem [resolvable:$true] %s115_s7  ;;  %s140_s4 = int_to_ptr.vmem [resolvable:$true] %s139_s4 }
  0x45   :  { %s3335_s0 = scalar_lea.hbm %s4321_s14, 16 }
  0x46   :  { %p3336_p2 = scmp.ne.s32.totalorder %s4321_s14, %s3335_s0  ;;  %p3339_p3 = scmp.lt.u32.totalorder %s3335_s0, %s4321_s14 }
  0x48   :  { %p3341_p4 = pnand %p3339_p3, %p3336_p2 }
  0x4a   :  { %3344 = shalt.err (!%p3341_p4)
}
  0x4b   :  { %s3345_s9 = scalar_lea.vmem %s116_s7, 16  ;;  %s3349_s30 = scalar_lea.vmem %s116_s7, 32 }
  0x4c   :  { %p3346_p5 = scmp.ne.s32.totalorder %s116_s7, %s3345_s9  ;;  %p3350_p6 = scmp.lt.s32.totalorder %s116_s7, %s116_s7 }
  0x4d   :  { %p3351_p7 = scmp.lt.s32.totalorder %s3349_s30, %s3345_s9 }
  0x4f   :  { %p3352_p8 = por %p3351_p7, %p3350_p6 }
  0x51   :  { %p3353_p9 = pnand %p3352_p8, %p3346_p5 }
  0x53   :  { %3356 = shalt.err (!%p3353_p9)
}
  0x54   :  { %118 = dma.hbm_to_vmem [thread:$0]  %s4321_s14, 16, %s116_s7, [#allocation12]  }
  0x55   :  { %s3357_s1 = scalar_lea.hbm %s4325_s18, 16 }
  0x56   :  { %p3358_p10 = scmp.ne.s32.totalorder %s4325_s18, %s3357_s1  ;;  %p3361_p11 = scmp.lt.u32.totalorder %s3357_s1, %s4325_s18 }
  0x58   :  { %p3363_p12 = pnand %p3361_p11, %p3358_p10 }
  0x5a   :  { %3366 = shalt.err (!%p3363_p12)
}
  0x5b   :  { %s3367_s11 = scalar_lea.vmem %s140_s4, 16  ;;  %s3371_s29 = scalar_lea.vmem %s140_s4, 32 }
  0x5c   :  { %p3368_p13 = scmp.ne.s32.totalorder %s140_s4, %s3367_s11  ;;  %p3372_p0 = scmp.lt.s32.totalorder %s140_s4, %s140_s4 }
  0x5d   :  { %p3373_p1 = scmp.lt.s32.totalorder %s3371_s29, %s3367_s11 }
  0x5f   :  { %p3374_p2 = por %p3373_p1, %p3372_p0 }
  0x61   :  { %p3375_p3 = pnand %p3374_p2, %p3368_p13 }
  0x63   :  { %3378 = shalt.err (!%p3375_p3)
}
  0x64   :  { %142 = dma.hbm_to_vmem [thread:$0]  %s4325_s18, 16, %s140_s4, [#allocation15]  }
  0x65   :  { %s3619_s19 = smov [#allocation17]   ;;  %s3620_s30 = smov [#allocation20]  }
  0x66   :  { %s165_s9 = sshll.u32 %s3619_s19, 4  ;;  %s186_s2 = sshll.u32 %s3620_s30, 4  ;;  %s166_s9 = int_to_ptr.vmem [resolvable:$true] %s165_s9  ;;  %s3829_s2 = int_to_ptr.vmem [resolvable:$true] %s186_s2 }
  0x67   :  { %s3379_s12 = scalar_lea.hbm %s4330_s23, 16 }
  0x68   :  { %p3380_p4 = scmp.ne.s32.totalorder %s4330_s23, %s3379_s12  ;;  %p3383_p5 = scmp.lt.u32.totalorder %s3379_s12, %s4330_s23 }
  0x6a   :  { %p3385_p6 = pnand %p3383_p5, %p3380_p4 }
  0x6c   :  { %3388 = shalt.err (!%p3385_p6)
}
  0x6d   :  { %s3389_s18 = scalar_lea.vmem %s166_s9, 16  ;;  %s3393_s4 = scalar_lea.vmem %s166_s9, 32 }
  0x6e   :  { %p3390_p7 = scmp.ne.s32.totalorder %s166_s9, %s3389_s18  ;;  %p3394_p8 = scmp.lt.s32.totalorder %s166_s9, %s166_s9 }
  0x6f   :  { %p3395_p9 = scmp.lt.s32.totalorder %s3393_s4, %s3389_s18 }
  0x71   :  { %p3396_p10 = por %p3395_p9, %p3394_p8 }
  0x73   :  { %p3397_p11 = pnand %p3396_p10, %p3390_p7 }
  0x75   :  { %3400 = shalt.err (!%p3397_p11)
}
  0x76   :  { %168 = dma.hbm_to_vmem [thread:$0]  %s4330_s23, 16, %s166_s9, [#allocation18]  }
  0x77   :  { %s3401_s7 = scalar_lea.hbm %s4333_s26, 256 }
  0x78   :  { %p3402_p12 = scmp.ne.s32.totalorder %s4333_s26, %s3401_s7  ;;  %p3405_p13 = scmp.lt.u32.totalorder %s3401_s7, %s4333_s26 }
  0x7a   :  { %p3407_p0 = pnand %p3405_p13, %p3402_p12 }
  0x7c   :  { %3410 = shalt.err (!%p3407_p0)
}
  0x7d   :  { %s3411_s12 = scalar_lea.vmem %s3829_s2, 256  ;;  %p3416_p2 = scmp.lt.s32.totalorder %s3829_s2, %s3829_s2 }
  0x7e   :  { %p3412_p1 = scmp.ne.s32.totalorder %s3829_s2, %s3411_s12  ;;  %p3417_p3 = scmp.lt.s32.totalorder %s3411_s12, %s3411_s12 }
  0x80   :  { %p3418_p4 = por %p3417_p3, %p3416_p2 }
  0x82   :  { %p3419_p5 = pnand %p3418_p4, %p3412_p1 }
  0x84   :  { %3422 = shalt.err (!%p3419_p5)
}
  0x85   :  { %s3621_s23 = smov 128   ;;  %s3622_s9 = smov 8  }
  0x86   :  { %192 = dma.hbm_to_vmem [thread:$0]  %s4333_s26, 256, %s3829_s2, [#allocation21], %s3621_s23, %s3621_s23, %s3622_s9  }
  0x87   :  { %s3623_s3 = smov [#allocation2]   ;;  %s3624_s18 = smov [#allocation7]  }
  0x88   :  { %s55_s0 = sshll.u32 %s3623_s3, 4  ;;  %s79_s4 = sshll.u32 %s3624_s18, 4  ;;  %s56_s0 = int_to_ptr.vmem [resolvable:$true] %s55_s0  ;;  %s80_s4 = int_to_ptr.vmem [resolvable:$true] %s79_s4 }
  0x89   :  { %s4360_s29 = sld [smem:[#allocation36_spill]] }
  0x8f   :  { %s3423_s14 = scalar_lea.hbm %s4360_s29, 128 }
  0x90   :  { %p3424_p6 = scmp.ne.s32.totalorder %s4360_s29, %s3423_s14  ;;  %p3427_p7 = scmp.lt.u32.totalorder %s3423_s14, %s4360_s29 }
  0x92   :  { %p3429_p8 = pnand %p3427_p7, %p3424_p6 }
  0x94   :  { %3432 = shalt.err (!%p3429_p8)
}
  0x95   :  { %s3433_s26 = scalar_lea.vmem %s56_s0, 128  ;;  %p3438_p10 = scmp.lt.s32.totalorder %s56_s0, %s56_s0 }
  0x96   :  { %p3434_p9 = scmp.ne.s32.totalorder %s56_s0, %s3433_s26  ;;  %p3439_p11 = scmp.lt.s32.totalorder %s3433_s26, %s3433_s26 }
  0x98   :  { %p3440_p12 = por %p3439_p11, %p3438_p10 }
  0x9a   :  { %p3441_p13 = pnand %p3440_p12, %p3434_p9 }
  0x9c   :  { %3444 = shalt.err (!%p3441_p13)
}
  0x9d   :  { %58 = dma.hbm_to_vmem [thread:$0]  %s4360_s29, 128, %s56_s0, [#allocation3]  }
  0x9e   :  { %s4361_s9 = sld [smem:[#allocation40_spill]] }
  0xa4   :  { %s3445_s1 = scalar_lea.hbm %s4361_s9, 16 }
  0xa5   :  { %p3446_p0 = scmp.ne.s32.totalorder %s4361_s9, %s3445_s1  ;;  %p3449_p1 = scmp.lt.u32.totalorder %s3445_s1, %s4361_s9 }
  0xa7   :  { %p3451_p2 = pnand %p3449_p1, %p3446_p0 }
  0xa9   :  { %3454 = shalt.err (!%p3451_p2)
}
  0xaa   :  { %s3455_s11 = scalar_lea.vmem %s80_s4, 16  ;;  %s3459_s14 = scalar_lea.vmem %s80_s4, 32 }
  0xab   :  { %p3456_p3 = scmp.ne.s32.totalorder %s80_s4, %s3455_s11  ;;  %p3460_p4 = scmp.lt.s32.totalorder %s80_s4, %s80_s4 }
  0xac   :  { %p3461_p5 = scmp.lt.s32.totalorder %s3459_s14, %s3455_s11 }
  0xae   :  { %p3462_p6 = por %p3461_p5, %p3460_p4 }
  0xb0   :  { %p3463_p7 = pnand %p3462_p6, %p3456_p3 }
  0xb2   :  { %3466 = shalt.err (!%p3463_p7)
}
  0xb3   :  { %82 = dma.hbm_to_vmem [thread:$0]  %s4361_s9, 16, %s80_s4, [#allocation6]  }
  0xb4   :  { %s3625_s7 = smov [#allocation10]   ;;  %s3626_s30 = smov [#allocation13]  }
  0xb5   :  { %s101_s19 = sshll.u32 %s3625_s7, 4  ;;  %s129_s8 = sshll.u32 %s3626_s30, 4  ;;  %s102_s19 = int_to_ptr.vmem [resolvable:$true] %s101_s19  ;;  %s130_s8 = int_to_ptr.vmem [resolvable:$true] %s129_s8 }
  0xb6   :  { %s4362_s6 = sld [smem:[#allocation43_spill]] }
  0xbc   :  { %s3467_s12 = scalar_lea.hbm %s4362_s6, 16 }
  0xbd   :  { %p3468_p8 = scmp.ne.s32.totalorder %s4362_s6, %s3467_s12  ;;  %p3471_p9 = scmp.lt.u32.totalorder %s3467_s12, %s4362_s6 }
  0xbf   :  { %p3473_p10 = pnand %p3471_p9, %p3468_p8 }
  0xc1   :  { %3476 = shalt.err (!%p3473_p10)
}
  0xc2   :  { %s3477_s4 = scalar_lea.vmem %s102_s19, 16  ;;  %s3481_s9 = scalar_lea.vmem %s102_s19, 32 }
  0xc3   :  { %p3478_p11 = scmp.ne.s32.totalorder %s102_s19, %s3477_s4  ;;  %p3482_p12 = scmp.lt.s32.totalorder %s102_s19, %s102_s19 }
  0xc4   :  { %p3483_p13 = scmp.lt.s32.totalorder %s3481_s9, %s3477_s4 }
  0xc6   :  { %p3484_p0 = por %p3483_p13, %p3482_p12 }
  0xc8   :  { %p3485_p1 = pnand %p3484_p0, %p3478_p11 }
  0xca   :  { %3488 = shalt.err (!%p3485_p1)
}
  0xcb   :  { %104 = dma.hbm_to_vmem [thread:$0]  %s4362_s6, 16, %s102_s19, [#allocation9]  }
  0xcc   :  { %s3489_s0 = scalar_lea.hbm %s4324_s17, 16 }
  0xcd   :  { %p3490_p2 = scmp.ne.s32.totalorder %s4324_s17, %s3489_s0  ;;  %p3493_p3 = scmp.lt.u32.totalorder %s3489_s0, %s4324_s17 }
  0xcf   :  { %p3495_p4 = pnand %p3493_p3, %p3490_p2 }
  0xd1   :  { %3498 = shalt.err (!%p3495_p4)
}
  0xd2   :  { %s3499_s2 = scalar_lea.vmem %s130_s8, 16  ;;  %s3503_s12 = scalar_lea.vmem %s130_s8, 32 }
  0xd3   :  { %p3500_p5 = scmp.ne.s32.totalorder %s130_s8, %s3499_s2  ;;  %p3504_p6 = scmp.lt.s32.totalorder %s130_s8, %s130_s8 }
  0xd4   :  { %p3505_p7 = scmp.lt.s32.totalorder %s3503_s12, %s3499_s2 }
  0xd6   :  { %p3506_p8 = por %p3505_p7, %p3504_p6 }
  0xd8   :  { %p3507_p9 = pnand %p3506_p8, %p3500_p5 }
  0xda   :  { %3510 = shalt.err (!%p3507_p9)
}
  0xdb   :  { %132 = dma.hbm_to_vmem [thread:$0]  %s4324_s17, 16, %s130_s8, [#allocation12]  }
  0xdc   :  { %s3627_s23 = smov [#allocation16]   ;;  %s3628_s5 = smov [#allocation19]  }
  0xdd   :  { %s151_s1 = sshll.u32 %s3627_s23, 4  ;;  %s177_s3 = sshll.u32 %s3628_s5, 4  ;;  %s152_s1 = int_to_ptr.vmem [resolvable:$true] %s151_s1  ;;  %s178_s3 = int_to_ptr.vmem [resolvable:$true] %s177_s3 }
  0xde   :  { %s3511_s18 = scalar_lea.hbm %s4327_s20, 16 }
  0xdf   :  { %p3512_p10 = scmp.ne.s32.totalorder %s4327_s20, %s3511_s18  ;;  %p3515_p11 = scmp.lt.u32.totalorder %s3511_s18, %s4327_s20 }
  0xe1   :  { %p3517_p12 = pnand %p3515_p11, %p3512_p10 }
  0xe3   :  { %3520 = shalt.err (!%p3517_p12)
}
  0xe4   :  { %s3521_s17 = scalar_lea.vmem %s152_s1, 16  ;;  %s3525_s8 = scalar_lea.vmem %s152_s1, 32 }
  0xe5   :  { %p3522_p13 = scmp.ne.s32.totalorder %s152_s1, %s3521_s17  ;;  %p3526_p0 = scmp.lt.s32.totalorder %s152_s1, %s152_s1 }
  0xe6   :  { %p3527_p1 = scmp.lt.s32.totalorder %s3525_s8, %s3521_s17 }
  0xe8   :  { %p3528_p2 = por %p3527_p1, %p3526_p0 }
  0xea   :  { %p3529_p3 = pnand %p3528_p2, %p3522_p13 }
  0xec   :  { %3532 = shalt.err (!%p3529_p3)
}
  0xed   :  { %154 = dma.hbm_to_vmem [thread:$0]  %s4327_s20, 16, %s152_s1, [#allocation15]  }
  0xee   :  { %s3533_s2 = scalar_lea.hbm %s4332_s25, 16 }
  0xef   :  { %p3534_p4 = scmp.ne.s32.totalorder %s4332_s25, %s3533_s2  ;;  %p3537_p5 = scmp.lt.u32.totalorder %s3533_s2, %s4332_s25 }
  0xf1   :  { %p3539_p6 = pnand %p3537_p5, %p3534_p4 }
  0xf3   :  { %3542 = shalt.err (!%p3539_p6)
}
  0xf4   :  { %s3543_s5 = scalar_lea.vmem %s178_s3, 16  ;;  %s3547_s4 = scalar_lea.vmem %s178_s3, 32 }
  0xf5   :  { %p3544_p7 = scmp.ne.s32.totalorder %s178_s3, %s3543_s5  ;;  %p3548_p8 = scmp.lt.s32.totalorder %s178_s3, %s178_s3 }
  0xf6   :  { %p3549_p9 = scmp.lt.s32.totalorder %s3547_s4, %s3543_s5 }
  0xf8   :  { %p3550_p10 = por %p3549_p9, %p3548_p8 }
  0xfa   :  { %p3551_p11 = pnand %p3550_p10, %p3544_p7 }
  0xfc   :  { %3554 = shalt.err (!%p3551_p11)
}
  0xfd   :  { %180 = dma.hbm_to_vmem [thread:$0]  %s4332_s25, 16, %s178_s3, [#allocation18]  }
  0xfe   :  { %s3629_s9 = smov [#allocation22]   ;;  %s3555_s14 = scalar_lea.hbm %s4334_s27, 16 }
  0xff   :  { %s199_s18 = sshll.u32 %s3629_s9, 4  ;;  %p3556_p12 = scmp.ne.s32.totalorder %s4334_s27, %s3555_s14  ;;  %s200_s18 = int_to_ptr.vmem [resolvable:$true] %s199_s18 }
 0x100   :  { %p3559_p13 = scmp.lt.u32.totalorder %s3555_s14, %s4334_s27 }
 0x102   :  { %p3561_p0 = pnand %p3559_p13, %p3556_p12 }
 0x104   :  { %3564 = shalt.err (!%p3561_p0)
}
 0x105   :  { %s3565_s7 = scalar_lea.vmem %s200_s18, 16  ;;  %s3569_s25 = scalar_lea.vmem %s200_s18, 32 }
 0x106   :  { %p3566_p1 = scmp.ne.s32.totalorder %s200_s18, %s3565_s7  ;;  %p3570_p2 = scmp.lt.s32.totalorder %s200_s18, %s200_s18 }
 0x107   :  { %p3571_p3 = scmp.lt.s32.totalorder %s3569_s25, %s3565_s7 }
 0x109   :  { %p3572_p4 = por %p3571_p3, %p3570_p2 }
 0x10b   :  { %p3573_p5 = pnand %p3572_p4, %p3566_p1 }
 0x10d   :  { %3576 = shalt.err (!%p3573_p5)
}
 0x10e   :  { %202 = dma.hbm_to_vmem [thread:$0]  %s4334_s27, 16, %s200_s18, [#allocation21]  }
 0x10f   :  { %3599 = dma.done.wait [#allocation3], 128  }
 0x110   :  { %3600 = vsyncadd [#allocation3], 4294967168 }
 0x111   :  { %3601 = dma.done.wait [#allocation6], 32  }
 0x112   :  { %3602 = vsyncadd [#allocation6], 4294967264 }
 0x113   :  { %3603 = dma.done.wait [#allocation9], 32  }
 0x114   :  { %3604 = vsyncadd [#allocation9], 4294967264 }
 0x115   :  { %3605 = dma.done.wait [#allocation12], 32  }
 0x116   :  { %3606 = vsyncadd [#allocation12], 4294967264 }
 0x117   :  { %3607 = dma.done.wait [#allocation15], 32  }
 0x118   :  { %3608 = vsyncadd [#allocation15], 4294967264 }
 0x119   :  { %3609 = dma.done.wait [#allocation18], 32  }
 0x11a   :  { %3610 = vsyncadd [#allocation18], 4294967264 }
 0x11b   :  { %3611 = dma.done.wait [#allocation21], 272  }
 0x11c   :  { %3612 = vsyncadd [#allocation21], 4294967024  ;;  %v3630_v0 = vmov 0   ;;  %s4363_s2 = sld [smem:[#allocation33_spill]]  ;;  %v3631_v2 = vmov 1   ;;  %vm255_vm0 = vcmask 1044480   ;;  %v333_v6 = vlaneseq }
 0x11d   :  { %3267 = vset.pattern.permute.xlu0 %v3630_v0  ;;  %3269 = vset.pattern.permute.xlu1 %v3630_v0  ;;  %v243_v3 = vld [vmem:[#allocation2] sm:$0x1f]  ;;  %s4364_s6 = sld [smem:[#allocation32_spill]]  ;;  %v3632_v5 = vmov 0.0   ;;  %vm3633_vm1 = vmmov 0   ;;  %vm251_vm2 = vcmask 39936  }
 0x11e   :  { %3003 = vmatprep.subr.mxu0 %v3632_v5  ;;  %3005 = vmatprep.mubr.msk.f32.mxu0 %vm3633_vm1, %v3632_v5  ;;  %v3964_v7 = vshrl.u32 %v333_v6, 7  ;;  %v3966_v8 = vand.u32 127, %v333_v6  ;;  %vm359_vm4 = vcmask 64512   ;;  %s4365_s4 = sld [smem:[#allocation34_spill]]  ;;  %s4366_s9 = sld [smem:[#allocation38_spill]]  ;;  %v3634_v37 = vmov 0.0|0.0  }
 0x11f   :  { %3004 = vmatpush3.msk.msra.mxu0 %vm255_vm0, %v243_v3  ;;  %3012 = vmatprep.mubr.msk.f32.mxu1 %vm3633_vm1, %v3632_v5  ;;  %v2880_v39 = vld [vmem:[#allocation5] ss:$0 sm:$0xff]  ;;  %vm391_vm6 = vcmask 130048   ;;  %s4367_s0 = sld [smem:[#allocation39_spill]]  ;;  %vm621_vm11 = vcmask 15360   ;;  %s4368_s25 = sld [smem:[#allocation42_spill]] }
 0x120   :  { %3015 = vmatprep.subr.mxu0 %v3632_v5  ;;  %vm337_vm3 = vcmp.eq.s32.totalorder %v3964_v7, %v3966_v8  ;;  %3187 = vmatprep.subr.bf16.mxu1 %v3634_v37  ;;  %v4006_v44 = vcvt.s32.f32 %v3966_v8 }
 0x122   :  { %v3949_v1 = vld [vmem:[%s4363_s2] sm:$0xff]  ;;  %s4370_s2 = sld [smem:[#allocation35_spill]] }
 0x123   :  { %355 = vperm.xlu0 %3267, %v3949_v1   ;;  %v242_v4 = vld [vmem:[%s4364_s6] sm:$0xff] }
 0x124   :  { %3006 = vmatmul.mubr.msk.f32.vlgmr.msra.gmra.mrb[0].mxu0 %vm251_vm2, %v242_v4  ;;  %v3981_v29 = vld [vmem:[%s4365_s4] sm:$0xff]  ;;  %v340_v36 = vld [vmem:[%s4366_s9 + $0x8] sm:$0xff] }
 0x125   :  { %3017 = vmatprep.mubr.msk.f32.mxu0 %vm3633_vm1, %v3632_v5  ;;  %vm332_vm5 = vcmp.gt.f32.partialorder %v3981_v29, 0.5  ;;  %v339_v35 = vld [vmem:[%s4366_s9] sm:$0xff]  ;;  %v342_v54 = vld [vmem:[%s4367_s0 + $0x8] sm:$0xff] }
 0x126   :  { %v3188_v38 = vpack.c.bf16 %v340_v36, %v339_v35  ;;  %v341_v53 = vld [vmem:[%s4367_s0] sm:$0xff] }
 0x127   :  { %3268 = vset.pattern.permute.xlu0 %v3631_v2  ;;  %v4025_v56 = vpack.c.bf16 %v342_v54, %v341_v53 }
 0x128   :  { %369 = vperm.xlu0 %3268, %v3949_v1   ;;  %3189 = vmatpush3.bf16.msra.mxu1 %v3188_v38 }
 0x129   :  { %3020 = vmatprep.subr.mxu1 %v3632_v5 }
 0x1a2   :  { %v356_v9 = vpop.permute.xlu0 %355 }
 0x1a3   :  { %v358_v10 = vsel %vm337_vm3, %v356_v9, 0.0 }
 0x1a4   :  { %v360_v11 = vsel %vm359_vm4, %v358_v10, 0.0 }
 0x1a5   :  { %v361_v12 = vrot.slane %v360_v11, 4 }
 0x1a7   :  { %v362_v13 = vadd.f32 %v361_v12, %v360_v11  ;;  %v370_v14 = vpop.permute.xlu0 %369  ;;  %v345_v12 = vld [vmem:[%s4368_s25] sm:$0xff] }
 0x1a8   :  { %v372_v15 = vsel %vm337_vm3, %v370_v14, 0.0 }
 0x1a9   :  { %v363_v16 = vrot.slane %v362_v13, 2  ;;  %v373_v17 = vsel %vm359_vm4, %v372_v15, 0.0 }
 0x1aa   :  { %v374_v18 = vrot.slane %v373_v17, 4 }
 0x1ab   :  { %v364_v19 = vadd.f32 %v363_v16, %v362_v13  ;;  %v346_v13 = vld [vmem:[%s4368_s25 + $0x8] sm:$0xff] }
 0x1ac   :  { %v375_v20 = vadd.f32 %v374_v18, %v373_v17 }
 0x1ad   :  { %v365_v21 = vrot.slane %v364_v19, 1 }
 0x1ae   :  { %v376_v22 = vrot.slane %v375_v20, 2 }
 0x1af   :  { %v366_v23 = vadd.f32 %v365_v21, %v364_v19  ;;  %v2883_v19 = vld [vmem:[#allocation8] ss:$0 sm:$0xff]  ;;  %v4060_v21 = vld [vmem:[#allocation7] ss:$0 sm:$0xff] }
 0x1b0   :  { %v377_v24 = vadd.f32 %v376_v22, %v375_v20 }
 0x1b1   :  { %v367_v26 = vsub.f32 %v356_v9, %v366_v23 }
 0x1b2   :  { %v378_v25 = vrot.slane %v377_v24, 1 }
 0x1b3   :  { %v381_v30 = vmul.f32 %v367_v26, %v367_v26 }
 0x1b4   :  { %v379_v27 = vadd.f32 %v378_v25, %v377_v24 }
 0x1b6   :  { %v380_v28 = vsub.f32 %v370_v14, %v379_v27  ;;  %v4056_v14 = vpack.c.bf16 %v346_v13, %v345_v12 }
 0x1b8   :  { %v382_v31 = vmul.f32 %v380_v28, %v380_v28 }
 0x1ba   :  { %v383_v32 = vadd.f32 %v382_v31, %v381_v30 }
 0x1bc   :  { %v384_v33 = vsel %vm332_vm5, %v383_v32, 1e+30 }
 0x1bd   :  { %v465_v34 = vsel %vm359_vm4, %v384_v33, inf }
 0x1be   :  { %466 = vmin.xlane.f32.xlu1 %v465_v34 }
 0x1f7   :  { %v325_v40 = vpop.f32.mrb[0].mxu0 }
 0x1f8   :  { %v326_v41 = vadd.f32 %v2880_v39, %v325_v40  ;;  %v3007_v42 = vpop.f32.mrb[1].mxu0 }
 0x1fa   :  { %v3995_v43 = vmax.f32 %v326_v41, 0.0 }
 0x1fc   :  { %3013 = vmatmul.mubr.msk.f32.vlgmr.msra.gmra.mrb[0].mxu1 %vm391_vm6, %v3995_v43  ;;  %3016 = vmatpush3.msra.mxu0 %v3995_v43 }
 0x1fd   :  { %3021 = vmatpush3.msra.mxu1 %v3949_v1  ;;  %3022 = vmatprep.mubr.msk.f32.mxu1 %vm3633_vm1, %v3632_v5 }
 0x1fe   :  { %3190 = vmatprep.subr.bf16.mxu0 %v3634_v37  ;;  %3193 = vmatprep.subr.bf16.mxu1 %v3634_v37 }
 0x24b   :  { %v467_v45 = vpop.xlane.xlu1 %466 }
 0x24c   :  { %vm468_vm7 = vcmp.le.f32.partialorder %v384_v33, %v467_v45 }
 0x24d   :  { %v469_v46 = vsel %vm468_vm7, %v4006_v44, 8.0 }
 0x24e   :  { %v470_v47 = vsel %vm359_vm4, %v469_v46, inf }
 0x24f   :  { %471 = vmin.xlane.f32.xlu1 %v470_v47 }
 0x2cf   :  { %v461_v52 = vpop.f32.mrb[0].mxu1 }
 0x2d0   :  { %v3014_v55 = vpop.f32.mrb[1].mxu1  ;;  %v4062_v23 = vadd.f32 %v2883_v19, %v461_v52 }
 0x2dc   :  { %v472_v48 = vpop.xlane.xlu1 %471 }
 0x2dd   :  { %vm473_vm8 = vcmp.eq.f32.partialorder %v4006_v44, %v472_v48 }
 0x2de   :  { %v2885_v49 = vsel %vm473_vm8, 1.0, %v3632_v5 }
 0x2df   :  { %3018 = vmatmul.mubr.msk.f32.vlgmr.msra.gmra.mrb[2].mxu0 %vm359_vm4, %v2885_v49  ;;  %3023 = vmatmul.mubr.msk.f32.vlgmr.msra.gmra.mrb[2].mxu1 %vm359_vm4, %v2885_v49  ;;  %vm798_vm9 = vcmp.gt.f32.partialorder %v2885_v49, 0.5 }
 0x2e0   :  { %v799_v50 = vsel %vm798_vm9, 1e+30, %v384_v33  ;;  %3029 = vmatprep.mubr.msk.f32.mxu0 %vm3633_vm1, %v3632_v5  ;;  %3036 = vmatprep.mubr.msk.f32.mxu1 %vm3633_vm1, %v3632_v5 }
 0x2e1   :  { %v800_v51 = vsel %vm359_vm4, %v799_v50, inf  ;;  %3192 = vmatpush3.bf16.msra.mxu0 %v4025_v56  ;;  %3195 = vmatpush3.bf16.msra.mxu1 %v4056_v14 }
 0x2e2   :  { %801 = vmin.xlane.f32.xlu1 %v800_v51  ;;  %3039 = vmatprep.subr.mxu0 %v3632_v5 }
 0x2e3   :  { %3044 = vmatprep.subr.mxu1 %v3632_v5 }
 0x36f   :  { %v802_v57 = vpop.xlane.xlu1 %801 }
 0x370   :  { %vm803_vm10 = vcmp.le.f32.partialorder %v799_v50, %v802_v57 }
 0x371   :  { %v804_v58 = vsel %vm803_vm10, %v4006_v44, 8.0 }
 0x372   :  { %v805_v59 = vsel %vm359_vm4, %v804_v58, inf }
 0x373   :  { %806 = vmin.xlane.f32.xlu0 %v805_v59 }
 0x3b2   :  { %v545_v60 = vpop.f32.mrb[2].mxu0  ;;  %v615_v61 = vpop.f32.mrb[2].mxu1 }
 0x3b3   :  { %v4032_v62 = vsub.f32 %v3949_v1, %v615_v61  ;;  %v3019_v63 = vpop.f32.mrb[3].mxu0  ;;  %v3024_v2 = vpop.f32.mrb[3].mxu1  ;;  %3030 = vmatmul.mubr.msk.f32.vlgmr.msra.gmra.mrb[4].mxu0 %vm391_vm6, %v545_v60 }
 0x3b4   :  { %3040 = vmatpush3.msra.mxu0 %v3995_v43  ;;  %3041 = vmatprep.mubr.msk.f32.mxu0 %vm3633_vm1, %v3632_v5 }
 0x3b5   :  { %v620_v3 = vmul.f32 %v4032_v62, %v4032_v62  ;;  %3196 = vmatprep.subr.bf16.mxu0 %v3634_v37 }
 0x3b7   :  { %v622_v4 = vsel %vm621_vm11, %v620_v3, 0.0  ;;  %v2890_v3 = vld [vmem:[#allocation10] ss:$0 sm:$0xff] }
 0x3b8   :  { %623 = vadd.xlane.f32.xlu1 %v622_v4 }
 0x400   :  { %v807_v6 = vpop.xlane.xlu0 %806 }
 0x401   :  { %vm808_vm12 = vcmp.eq.f32.partialorder %v4006_v44, %v807_v6 }
 0x402   :  { %v2892_v9 = vsel %vm808_vm12, 1.0, %v3632_v5 }
 0x403   :  { %3042 = vmatmul.mubr.msk.f32.vlgmr.msra.gmra.mrb[6].mxu0 %vm359_vm4, %v2892_v9  ;;  %vm1120_vm13 = vcmp.gt.f32.partialorder %v2892_v9, 0.5 }
 0x404   :  { %v1121_v10 = vsel %vm1120_vm13, 1e+30, %v799_v50  ;;  %3198 = vmatpush3.bf16.msra.mxu0 %v4025_v56  ;;  %3053 = vmatprep.mubr.msk.f32.mxu0 %vm3633_vm1, %v3632_v5 }
 0x405   :  { %v1122_v11 = vsel %vm359_vm4, %v1121_v10, inf  ;;  %3063 = vmatprep.subr.mxu0 %v3632_v5 }
 0x406   :  { %1123 = vmin.xlane.f32.xlu1 %v1122_v11 }
 0x445   :  { %v624_v15 = vpop.xlane.xlu1 %623 }
 0x446   :  { %3271 = vrsqrt.f32 %v624_v15  ;;  %vm627_vm14 = vcmp.eq.f32.partialorder %v624_v15, inf  ;;  %v630_v20 = vand.u32 2147483648, %v624_v15  ;;  %vm629_vm15 = vcmp.eq.f32.partialorder %v624_v15, 0.0 }
 0x450   :  { %v3272_v16 = vpop.eup %3271 }
 0x451   :  { %v626_v17 = vmul.f32 %v3272_v16, %v624_v15 }
 0x453   :  { %v628_v18 = vsel %vm627_vm14, %v624_v15, %v626_v17 }
 0x454   :  { %v631_v22 = vsel %vm629_vm15, %v630_v20, %v628_v18 }
 0x455   :  { %v712_v26 = vmul.f32 %v4060_v21, %v631_v22  ;;  %v350_v22 = vld [vmem:[%s4320_s13] sm:$0xff] }
 0x486   :  { %v701_v24 = vpop.f32.mrb[4].mxu0 }
 0x487   :  { %v705_v25 = vadd.f32 %v701_v24, %v4062_v23  ;;  %v3031_v27 = vpop.f32.mrb[5].mxu0  ;;  %v351_v24 = vld [vmem:[%s4320_s13 + $0x8] sm:$0xff]  ;;  %s4369_s13 = sld [smem:[#allocation44_spill]] }
 0x489   :  { %v4066_v28 = vadd.f32 %v712_v26, %v705_v25  ;;  %v3209_v25 = vpack.c.bf16 %v351_v24, %v350_v22 }
 0x48b   :  { %v714_v30 = vmax.f32 %v4066_v28, 0.0 }
 0x48d   :  { %3037 = vmatmul.mubr.msk.f32.vlgmr.msra.gmra.mrb[4].mxu1 %vm391_vm6, %v714_v30 }
 0x48e   :  { %3045 = vmatpush3.msra.mxu1 %v3949_v1  ;;  %3046 = vmatprep.mubr.msk.f32.mxu1 %vm3633_vm1, %v3632_v5 }
 0x48f   :  { %3199 = vmatprep.subr.bf16.mxu1 %v3634_v37 }
 0x491   :  { %3047 = vmatmul.mubr.msk.f32.vlgmr.msra.gmra.mrb[6].mxu1 %vm359_vm4, %v2892_v9 }
 0x492   :  { %3201 = vmatpush3.bf16.msra.mxu1 %v4056_v14  ;;  %3060 = vmatprep.mubr.msk.f32.mxu1 %vm3633_vm1, %v3632_v5 }
 0x493   :  { %v1124_v31 = vpop.xlane.xlu1 %1123  ;;  %3068 = vmatprep.subr.mxu1 %v3632_v5 }
 0x494   :  { %vm1125_vm0 = vcmp.le.f32.partialorder %v1121_v10, %v1124_v31 }
 0x495   :  { %v1126_v32 = vsel %vm1125_vm0, %v4006_v44, 8.0 }
 0x496   :  { %v1127_v33 = vsel %vm359_vm4, %v1126_v32, inf }
 0x497   :  { %1128 = vmin.xlane.f32.xlu1 %v1127_v33 }
 0x4d6   :  { %v880_v34 = vpop.f32.mrb[6].mxu0 }
 0x4d7   :  { %v3043_v35 = vpop.f32.mrb[7].mxu0  ;;  %3054 = vmatmul.mubr.msk.f32.vlgmr.msra.gmra.mrb[8].mxu0 %vm391_vm6, %v880_v34 }
 0x4d8   :  { %3064 = vmatpush3.msra.mxu0 %v3995_v43  ;;  %3065 = vmatprep.mubr.msk.f32.mxu0 %vm3633_vm1, %v3632_v5 }
 0x4d9   :  { %3202 = vmatprep.subr.bf16.mxu0 %v3634_v37 }
 0x524   :  { %v1129_v36 = vpop.xlane.xlu1 %1128 }
 0x525   :  { %vm1130_vm2 = vcmp.eq.f32.partialorder %v4006_v44, %v1129_v36  ;;  %v348_v36 = vld [vmem:[%s4369_s13] sm:$0xff] }
 0x526   :  { %v2897_v38 = vsel %vm1130_vm2, 1.0, %v3632_v5 }
 0x527   :  { %3066 = vmatmul.mubr.msk.f32.vlgmr.msra.gmra.mrb[10].mxu0 %vm359_vm4, %v2897_v38 }
 0x528   :  { %3204 = vmatpush3.bf16.msra.mxu0 %v4025_v56  ;;  %3077 = vmatprep.mubr.msk.f32.mxu0 %vm3633_vm1, %v3632_v5 }
 0x529   :  { %3208 = vmatprep.subr.bf16.mxu0 %v3634_v37 }
 0x560   :  { %v790_v39 = vpop.f32.mrb[4].mxu1 }
 0x561   :  { %v3038_v40 = vpop.f32.mrb[5].mxu1  ;;  %v791_v4 = vadd.f32 %v2890_v3, %v790_v39 }
 0x563   :  { %v794_v9 = vmax.f32 %v791_v4, 0.0 }
 0x564   :  { %v950_v41 = vpop.f32.mrb[6].mxu1 }
 0x565   :  { %v954_v42 = vsub.f32 %v3949_v1, %v950_v41  ;;  %v3048_v45 = vpop.f32.mrb[7].mxu1  ;;  %v796_v15 = vmul.f32 %v794_v9, %v4032_v62 }
 0x567   :  { %v955_v46 = vmul.f32 %v954_v42, %v954_v42 }
 0x569   :  { %v956_v47 = vsel %vm621_vm11, %v955_v46, 0.0 }
 0x56a   :  { %957 = vadd.xlane.f32.xlu1 %v956_v47 }
 0x5aa   :  { %v1035_v48 = vpop.f32.mrb[8].mxu0 }
 0x5ab   :  { %v3055_v49 = vpop.f32.mrb[9].mxu0  ;;  %v1039_v58 = vadd.f32 %v1035_v48, %v4062_v23  ;;  %v2904_v48 = vld [vmem:[#allocation11] ss:$0 sm:$0xff] }
 0x5f7   :  { %v958_v50 = vpop.xlane.xlu1 %957 }
 0x5f8   :  { %3273 = vrsqrt.f32 %v958_v50  ;;  %vm961_vm7 = vcmp.eq.f32.partialorder %v958_v50, inf  ;;  %v964_v55 = vand.u32 2147483648, %v958_v50  ;;  %vm963_vm8 = vcmp.eq.f32.partialorder %v958_v50, 0.0 }
 0x5fa   :  { %v1202_v51 = vpop.f32.mrb[10].mxu0 }
 0x5fb   :  { %v3067_v52 = vpop.f32.mrb[11].mxu0  ;;  %3078 = vmatmul.mubr.msk.f32.vlgmr.msra.gmra.mrb[12].mxu0 %vm391_vm6, %v1202_v51 }
 0x5fc   :  { %3091 = vmatprep.mubr.msk.f32.mxu0 %vm3633_vm1, %v3632_v5  ;;  %3210 = vmatpush3.bf16.msra.mxu0 %v3209_v25 }
 0x5fd   :  { %3214 = vmatprep.subr.bf16.mxu0 %v3634_v37 }
 0x602   :  { %v3274_v53 = vpop.eup %3273 }
 0x603   :  { %v960_v54 = vmul.f32 %v3274_v53, %v958_v50 }
 0x605   :  { %v962_v56 = vsel %vm961_vm7, %v958_v50, %v960_v54 }
 0x606   :  { %v965_v57 = vsel %vm963_vm8, %v964_v55, %v962_v56 }
 0x607   :  { %v1040_v59 = vmul.f32 %v4060_v21, %v965_v57 }
 0x609   :  { %v1041_v60 = vadd.f32 %v1040_v59, %v1039_v58 }
 0x60b   :  { %v1042_v61 = vmax.f32 %v1041_v60, 0.0 }
 0x60d   :  { %3061 = vmatmul.mubr.msk.f32.vlgmr.msra.gmra.mrb[8].mxu1 %vm391_vm6, %v1042_v61 }
 0x60e   :  { %3069 = vmatpush3.msra.mxu1 %v3949_v1  ;;  %3070 = vmatprep.mubr.msk.f32.mxu1 %vm3633_vm1, %v3632_v5 }
 0x60f   :  { %3205 = vmatprep.subr.bf16.mxu1 %v3634_v37 }
 0x611   :  { %3071 = vmatmul.mubr.msk.f32.vlgmr.msra.gmra.mrb[10].mxu1 %vm359_vm4, %v2897_v38  ;;  %v349_v38 = vld [vmem:[%s4369_s13 + $0x8] sm:$0xff] }
 0x612   :  { %3207 = vmatpush3.bf16.msra.mxu1 %v4056_v14  ;;  %3084 = vmatprep.mubr.msk.f32.mxu1 %vm3633_vm1, %v3632_v5  ;;  %v3212_v40 = vpack.c.bf16 %v349_v38, %v348_v36 }
 0x613   :  { %3211 = vmatprep.subr.bf16.mxu1 %v3634_v37 }
 0x6ce   :  { %v1357_v63 = vpop.f32.mrb[12].mxu0 }
 0x6cf   :  { %v3079_v2 = vpop.f32.mrb[13].mxu0  ;;  %v1361_v34 = vadd.f32 %v1357_v63, %v4062_v23 }
 0x6e0   :  { %v1112_v6 = vpop.f32.mrb[8].mxu1 }
 0x6e1   :  { %v1113_v10 = vadd.f32 %v2890_v3, %v1112_v6  ;;  %v3062_v11 = vpop.f32.mrb[9].mxu1 }
 0x6e3   :  { %v1116_v12 = vmax.f32 %v1113_v10, 0.0 }
 0x6e4   :  { %v1272_v13 = vpop.f32.mrb[10].mxu1 }
 0x6e5   :  { %v1118_v16 = vmul.f32 %v1116_v12, %v954_v42  ;;  %v1276_v14 = vsub.f32 %v3949_v1, %v1272_v13  ;;  %v3072_v17 = vpop.f32.mrb[11].mxu1  ;;  %v1117_v42 = vadd.f32 %v1042_v61, %v714_v30 }
 0x6e7   :  { %v1119_v18 = vadd.f32 %v1118_v16, %v796_v15  ;;  %v1277_v19 = vmul.f32 %v1276_v14, %v1276_v14 }
 0x6e9   :  { %v1278_v20 = vsel %vm621_vm11, %v1277_v19, 0.0 }
 0x6ea   :  { %1279 = vadd.xlane.f32.xlu1 %v1278_v20 }
 0x777   :  { %v1280_v62 = vpop.xlane.xlu1 %1279 }
 0x778   :  { %3275 = vrsqrt.f32 %v1280_v62  ;;  %vm1283_vm9 = vcmp.eq.f32.partialorder %v1280_v62, inf  ;;  %v1286_v31 = vand.u32 2147483648, %v1280_v62  ;;  %vm1285_vm10 = vcmp.eq.f32.partialorder %v1280_v62, 0.0 }
 0x782   :  { %v3276_v26 = vpop.eup %3275 }
 0x783   :  { %v1282_v27 = vmul.f32 %v3276_v26, %v1280_v62 }
 0x785   :  { %v1284_v32 = vsel %vm1283_vm9, %v1280_v62, %v1282_v27 }
 0x786   :  { %v1287_v33 = vsel %vm1285_vm10, %v1286_v31, %v1284_v32 }
 0x787   :  { %v1362_v35 = vmul.f32 %v4060_v21, %v1287_v33 }
 0x789   :  { %v1363_v39 = vadd.f32 %v1362_v35, %v1361_v34 }
 0x78b   :  { %v1364_v41 = vmax.f32 %v1363_v39, 0.0 }
 0x78d   :  { %3085 = vmatmul.mubr.msk.f32.vlgmr.msra.gmra.mrb[12].mxu1 %vm391_vm6, %v1364_v41  ;;  %v1439_v45 = vadd.f32 %v1364_v41, %v1117_v42 }
 0x78e   :  { %3213 = vmatpush3.bf16.msra.mxu1 %v3212_v40  ;;  %3098 = vmatprep.mubr.msk.f32.mxu1 %vm3633_vm1, %v3632_v5 }
 0x78f   :  { %3092 = vmatmul.mubr.msk.f32.vlgmr.msra.gmra.mrb[14].mxu0 %vm391_vm6, %v1439_v45  ;;  %3108 = vmatprep.subr.mxu1 %v3632_v5 }
 0x790   :  { %3105 = vmatprep.mubr.msk.f32.mxu0 %vm3633_vm1, %v3632_v5 }
 0x791   :  { %3099 = vmatmul.mubr.msk.f32.vlgmr.msra.gmra.mrb[14].mxu1 %vm391_vm6, %v3995_v43 }
 0x792   :  { %3110 = vmatprep.mubr.msk.f32.mxu1 %vm3633_vm1, %v3632_v5 }
 0x860   :  { %v1434_v21 = vpop.f32.mrb[12].mxu1 }
 0x861   :  { %v1435_v23 = vadd.f32 %v2890_v3, %v1434_v21  ;;  %v3086_v28 = vpop.f32.mrb[13].mxu1 }
 0x862   :  { %v1512_v30 = vpop.f32.mrb[14].mxu0 }
 0x863   :  { %v1438_v46 = vmax.f32 %v1435_v23, 0.0  ;;  %v3093_v47 = vpop.f32.mrb[15].mxu0 }
 0x864   :  { %v1582_v49 = vpop.f32.mrb[14].mxu1 }
 0x865   :  { %v1440_v50 = vmul.f32 %v1438_v46, %v1276_v14  ;;  %v1583_v51 = vadd.f32 %v1582_v49, %v1512_v30  ;;  %v3100_v52 = vpop.f32.mrb[15].mxu1  ;;  %v1636_v30 = vld [vmem:[%s4322_s15] sm:$0xff]  ;;  %v1637_v46 = vld [vmem:[%s4322_s15 + $0x8] sm:$0xff] }
 0x866   :  { %v3215_v47 = vpack.c.bf16 %v1637_v46, %v1636_v30 }
 0x867   :  { %v1441_v53 = vadd.f32 %v1440_v50, %v1119_v18  ;;  %v1592_v54 = vadd.f32 %v2904_v48, %v1583_v51 }
 0x868   :  { %3216 = vmatpush3.bf16.msra.mxu0 %v3215_v47 }
 0x869   :  { %v1442_v55 = vmul.f32 0.33333334, %v1441_v53  ;;  %v1593_v56 = vmax.f32 %v1592_v54, 0.0  ;;  %3113 = vmatprep.subr.mxu0 %v3632_v5 }
 0x86b   :  { %v4144_v43 = vadd.f32 %v1442_v55, %v3949_v1  ;;  %v1594_v57 = vsel %vm391_vm6, %v1593_v56, 0.0 }
 0x86c   :  { %v1595_v58 = vrot.slane %v1594_v57, 4 }
 0x86d   :  { %1662 = vperm.xlu0 %3268, %v4144_v43   ;;  %1649 = vperm.xlu1 %3269, %v4144_v43  }
 0x86e   :  { %v1596_v59 = vadd.f32 %v1595_v58, %v1594_v57 }
 0x870   :  { %v1597_v60 = vrot.slane %v1596_v59, 2 }
 0x871   :  { %3270 = vset.pattern.permute.xlu0 %v3630_v0 }
 0x872   :  { %v1598_v61 = vadd.f32 %v1597_v60, %v1596_v59  ;;  %v1638_v60 = vld [vmem:[%s4323_s16] sm:$0xff] }
 0x874   :  { %v1599_v63 = vrot.slane %v1598_v61, 1 }
 0x876   :  { %v1600_v2 = vadd.f32 %v1599_v63, %v1598_v61  ;;  %v1639_v61 = vld [vmem:[%s4323_s16 + $0x8] sm:$0xff] }
 0x878   :  { %v1602_v3 = vmul.f32 0.125, %v1600_v2  ;;  %v4191_v2 = vpack.c.bf16 %v1639_v61, %v1638_v60  ;;  %v1643_v60 = vld [vmem:[%s4328_s21 + $0x8] sm:$0xff] }
 0x87a   :  { %v4150_v4 = vsub.f32 %v1593_v56, %v1602_v3 }
 0x87c   :  { %v1604_v1 = vmul.f32 %v4150_v4, %v4150_v4 }
 0x87e   :  { %v1605_v6 = vsel %vm391_vm6, %v1604_v1, 0.0 }
 0x891   :  { %1606 = vadd.xlane.f32.xlu1 %v1605_v6 }
 0x8ec   :  { %v1663_v9 = vpop.permute.xlu0 %1662  ;;  %v1650_v10 = vpop.permute.xlu1 %1649 }
 0x8ed   :  { %v1665_v11 = vsel %vm337_vm3, %v1663_v9, 0.0  ;;  %v1652_v0 = vsel %vm337_vm3, %v1650_v10, 0.0  ;;  %vm1608_vm3 = vcmask 7168  }
 0x8ee   :  { %v1666_v12 = vsel %vm359_vm4, %v1665_v11, 0.0  ;;  %v1653_v13 = vsel %vm359_vm4, %v1652_v0, 0.0 }
 0x8ef   :  { %v1667_v15 = vrot.slane %v1666_v12, 4  ;;  %v1654_v16 = vrot.slane %v1653_v13, 4 }
 0x8f1   :  { %v1668_v14 = vadd.f32 %v1667_v15, %v1666_v12  ;;  %v1655_v17 = vadd.f32 %v1654_v16, %v1653_v13 }
 0x8f3   :  { %v1669_v18 = vrot.slane %v1668_v14, 2  ;;  %v1656_v19 = vrot.slane %v1655_v17, 2 }
 0x8f5   :  { %v1670_v20 = vadd.f32 %v1669_v18, %v1668_v14  ;;  %v1657_v22 = vadd.f32 %v1656_v19, %v1655_v17 }
 0x8f7   :  { %v1671_v24 = vrot.slane %v1670_v20, 1  ;;  %v1658_v25 = vrot.slane %v1657_v22, 1 }
 0x8f9   :  { %v1672_v62 = vadd.f32 %v1671_v24, %v1670_v20  ;;  %v1659_v26 = vadd.f32 %v1658_v25, %v1657_v22  ;;  %v2905_v25 = vld [vmem:[#allocation14] ss:$0 sm:$0xff] }
 0x8fb   :  { %v1673_v27 = vsub.f32 %v1663_v9, %v1672_v62  ;;  %v1660_v31 = vsub.f32 %v1650_v10, %v1659_v26 }
 0x8fd   :  { %v1675_v7 = vmul.f32 %v1673_v27, %v1673_v27  ;;  %v1674_v8 = vmul.f32 %v1660_v31, %v1660_v31 }
 0x8ff   :  { %v1676_v32 = vadd.f32 %v1675_v7, %v1674_v8 }
 0x901   :  { %v1677_v33 = vsel %vm332_vm5, %v1676_v32, 1e+30 }
 0x902   :  { %v1757_v34 = vsel %vm359_vm4, %v1677_v33, inf }
 0x903   :  { %1758 = vmin.xlane.f32.xlu0 %v1757_v34 }
 0x91e   :  { %v1607_v35 = vpop.xlane.xlu1 %1606 }
 0x91f   :  { %v1609_v36 = vsel %vm1608_vm3, %v1607_v35, 0.0 }
 0x920   :  { %1610 = vadd.xlane.f32.xlu1 %v1609_v36 }
 0x990   :  { %v1759_v38 = vpop.xlane.xlu0 %1758 }
 0x991   :  { %vm1760_vm12 = vcmp.le.f32.partialorder %v1677_v33, %v1759_v38 }
 0x992   :  { %v1761_v39 = vsel %vm1760_vm12, %v4006_v44, 8.0 }
 0x993   :  { %v1762_v40 = vsel %vm359_vm4, %v1761_v39, inf }
 0x994   :  { %1763 = vmin.xlane.f32.xlu1 %v1762_v40 }
 0x9ad   :  { %v1611_v41 = vpop.xlane.xlu1 %1610 }
 0x9ae   :  { %v1612_v42 = vrot.slane %v1611_v41, 4 }
 0x9b0   :  { %v1613_v45 = vadd.f32 %v1612_v42, %v1611_v41 }
 0x9b2   :  { %v1614_v29 = vrot.slane %v1613_v45, 2 }
 0x9b4   :  { %v1615_v21 = vadd.f32 %v1614_v29, %v1613_v45 }
 0x9b6   :  { %v1616_v23 = vrot.slane %v1615_v21, 1 }
 0x9b8   :  { %v1617_v28 = vadd.f32 %v1616_v23, %v1615_v21 }
 0x9ba   :  { %3238 = vpush %v1617_v28  ;;  %v2911_v28 = vld [vmem:[#allocation13] ss:$0 sm:$0xff] }
 0x9eb   :  { %s3239_s18 = spop %3238 }
 0x9ec   :  { %s1621_s10 = smul.f32 0.125, %s3239_s18 }
 0x9ee   :  { %s1622_s11 = sadd.f32 1e-06, %s1621_s10 }
 0x9f0   :  { %v1623_v48 = vstv %s1622_s11 }
 0x9f1   :  { %3277 = vrsqrt.f32 %v1623_v48  ;;  %vm1626_vm5 = vcmp.eq.f32.partialorder %v1623_v48, inf  ;;  %v1629_v51 = vand.u32 2147483648, %v1623_v48  ;;  %vm1628_vm13 = vcmp.eq.f32.partialorder %v1623_v48, 0.0 }
 0x9fb   :  { %v3278_v49 = vpop.eup %3277 }
 0x9fc   :  { %v1625_v50 = vmul.f32 %v3278_v49, %v1623_v48 }
 0x9fe   :  { %v1627_v52 = vsel %vm1626_vm5, %v1623_v48, %v1625_v50 }
 0x9ff   :  { %v1630_v53 = vsel %vm1628_vm13, %v1629_v51, %v1627_v52 }
 0xa00   :  { %3240 = vpush %v1630_v53 }
 0xa21   :  { %v1764_v54 = vpop.xlane.xlu1 %1763 }
 0xa22   :  { %vm1765_vm14 = vcmp.eq.f32.partialorder %v4006_v44, %v1764_v54 }
 0xa23   :  { %v2907_v55 = vsel %vm1765_vm14, 1.0, %v3632_v5 }
 0xa24   :  { %vm2007_vm15 = vcmp.gt.f32.partialorder %v2907_v55, 0.5 }
 0xa25   :  { %v2008_v56 = vsel %vm2007_vm15, 1e+30, %v1677_v33 }
 0xa26   :  { %v2009_v57 = vsel %vm359_vm4, %v2008_v56, inf }
 0xa27   :  { %2010 = vmin.xlane.f32.xlu1 %v2009_v57 }
 0xa31   :  { %s3241_s15 = spop %3240 }
 0xa32   :  { %v1632_v58 = vstv %s3241_s15 }
 0xa33   :  { %3279 = vrcp.f32 %v1632_v58 }
 0xa3d   :  { %v3280_v59 = vpop.eup %3279 }
 0xa3e   :  { %v4186_v63 = vmul.f32 %v3280_v59, %v4150_v4  ;;  %v1642_v59 = vld [vmem:[%s4328_s21] sm:$0xff] }
 0xa3f   :  { %v3230_v61 = vpack.c.bf16 %v1643_v60, %v1642_v59 }
 0xa40   :  { %3106 = vmatmul.mubr.msk.f32.vlgmr.msra.gmra.mrb[16].mxu0 %vm391_vm6, %v4186_v63  ;;  %3109 = vmatpush3.msra.mxu1 %v4186_v63 }
 0xa41   :  { %3114 = vmatpush3.msra.mxu0 %v4144_v43  ;;  %3111 = vmatmul.mubr.msk.f32.vlgmr.msra.gmra.mrb[16].mxu1 %vm359_vm4, %v2907_v55 }
 0xa42   :  { %3115 = vmatprep.mubr.msk.f32.mxu0 %vm3633_vm1, %v3632_v5  ;;  %3125 = vmatprep.subr.mxu0 %v3632_v5 }
 0xa43   :  { %3217 = vmatprep.subr.bf16.mxu1 %v3634_v37  ;;  %3122 = vmatprep.mubr.msk.f32.mxu1 %vm3633_vm1, %v3632_v5 }
 0xa44   :  { %3116 = vmatmul.mubr.msk.f32.vlgmr.msra.gmra.mrb[18].mxu0 %vm359_vm4, %v2907_v55  ;;  %3219 = vmatpush3.bf16.msra.mxu1 %v4191_v2 }
 0xa45   :  { %3126 = vmatpush3.msra.mxu0 %v4186_v63  ;;  %3130 = vmatprep.subr.mxu1 %v3632_v5 }
 0xa46   :  { %3127 = vmatprep.mubr.msk.f32.mxu0 %vm3633_vm1, %v3632_v5  ;;  %3220 = vmatprep.subr.bf16.mxu0 %v3634_v37 }
 0xab4   :  { %v2011_v3 = vpop.xlane.xlu1 %2010 }
 0xab5   :  { %vm2012_vm0 = vcmp.le.f32.partialorder %v2008_v56, %v2011_v3 }
 0xab6   :  { %v2013_v4 = vsel %vm2012_vm0, %v4006_v44, 8.0 }
 0xab7   :  { %v2014_v1 = vsel %vm359_vm4, %v2013_v4, inf }
 0xab8   :  { %2015 = vmin.xlane.f32.xlu0 %v2014_v1 }
 0xb13   :  { %v1753_v6 = vpop.f32.mrb[16].mxu0 }
 0xb14   :  { %v3107_v9 = vpop.f32.mrb[17].mxu0  ;;  %v1837_v10 = vpop.f32.mrb[16].mxu1  ;;  %v4232_v62 = vadd.f32 %v2905_v25, %v1753_v6 }
 0xb15   :  { %v3112_v11 = vpop.f32.mrb[17].mxu1  ;;  %3123 = vmatmul.mubr.msk.f32.vlgmr.msra.gmra.mrb[18].mxu1 %vm391_vm6, %v1837_v10 }
 0xb16   :  { %3131 = vmatpush3.msra.mxu1 %v4144_v43  ;;  %3132 = vmatprep.mubr.msk.f32.mxu1 %vm3633_vm1, %v3632_v5  ;;  %v1645_v11 = vld [vmem:[%s4329_s22 + $0x8] sm:$0xff] }
 0xb17   :  { %v1907_v0 = vpop.f32.mrb[18].mxu0  ;;  %3142 = vmatprep.subr.mxu1 %v3632_v5 }
 0xb18   :  { %v3117_v12 = vpop.f32.mrb[19].mxu0  ;;  %v1911_v15 = vsub.f32 %v4144_v43, %v1907_v0 }
 0xb1a   :  { %v1912_v17 = vmul.f32 %v1911_v15, %v1911_v15 }
 0xb1c   :  { %v1913_v19 = vsel %vm621_vm11, %v1912_v17, 0.0 }
 0xb45   :  { %v2016_v13 = vpop.xlane.xlu0 %2015 }
 0xb46   :  { %vm2017_vm2 = vcmp.eq.f32.partialorder %v4006_v44, %v2016_v13 }
 0xb47   :  { %v2912_v16 = vsel %vm2017_vm2, 1.0, %v3632_v5 }
 0xb48   :  { %3128 = vmatmul.mubr.msk.f32.vlgmr.msra.gmra.mrb[20].mxu0 %vm359_vm4, %v2912_v16  ;;  %3133 = vmatmul.mubr.msk.f32.vlgmr.msra.gmra.mrb[20].mxu1 %vm359_vm4, %v2912_v16  ;;  %vm2253_vm7 = vcmp.gt.f32.partialorder %v2912_v16, 0.5 }
 0xb49   :  { %3143 = vmatpush3.msra.mxu1 %v4186_v63  ;;  %v2254_v14 = vsel %vm2253_vm7, 1e+30, %v2008_v56  ;;  %3222 = vmatpush3.bf16.msra.mxu0 %v4191_v2 }
 0xb4a   :  { %v2255_v18 = vsel %vm359_vm4, %v2254_v14, inf  ;;  %3139 = vmatprep.mubr.msk.f32.mxu0 %vm3633_vm1, %v3632_v5  ;;  %3147 = vmatprep.subr.mxu0 %v3632_v5 }
 0xb4b   :  { %2256 = vmin.xlane.f32.xlu1 %v2255_v18  ;;  %3144 = vmatprep.mubr.msk.f32.mxu1 %vm3633_vm1, %v3632_v5 }
 0xb4c   :  { %3223 = vmatprep.subr.bf16.mxu1 %v3634_v37 }
 0xb4f   :  { %1914 = vadd.xlane.f32.xlu1 %v1913_v19 }
 0xbd8   :  { %v2257_v20 = vpop.xlane.xlu1 %2256 }
 0xbd9   :  { %vm2258_vm8 = vcmp.le.f32.partialorder %v2254_v14, %v2257_v20 }
 0xbda   :  { %v2259_v22 = vsel %vm2258_vm8, %v4006_v44, 8.0 }
 0xbdb   :  { %v2260_v24 = vsel %vm359_vm4, %v2259_v22, inf }
 0xbdc   :  { %2261 = vmin.xlane.f32.xlu0 %v2260_v24  ;;  %v1915_v40 = vpop.xlane.xlu1 %1914 }
 0xbdd   :  { %3281 = vrsqrt.f32 %v1915_v40  ;;  %vm1918_vm10 = vcmp.eq.f32.partialorder %v1915_v40, inf  ;;  %v1921_v23 = vand.u32 2147483648, %v1915_v40 }
 0xbe8   :  { %v1992_v26 = vpop.f32.mrb[18].mxu1 }
 0xbe9   :  { %v1996_v27 = vadd.f32 %v1992_v26, %v4232_v62  ;;  %v3124_v31 = vpop.f32.mrb[19].mxu1 }
 0xc1b   :  { %v2089_v7 = vpop.f32.mrb[20].mxu0  ;;  %v2159_v8 = vpop.f32.mrb[20].mxu1 }
 0xc1c   :  { %v2163_v32 = vsub.f32 %v4144_v43, %v2159_v8  ;;  %v3129_v33 = vpop.f32.mrb[21].mxu0  ;;  %v3134_v34 = vpop.f32.mrb[21].mxu1  ;;  %3140 = vmatmul.mubr.msk.f32.vlgmr.msra.gmra.mrb[22].mxu0 %vm391_vm6, %v2089_v7 }
 0xc1d   :  { %3148 = vmatpush3.msra.mxu0 %v4144_v43  ;;  %3149 = vmatprep.mubr.msk.f32.mxu0 %vm3633_vm1, %v3632_v5 }
 0xc1e   :  { %v2164_v35 = vmul.f32 %v2163_v32, %v2163_v32  ;;  %3226 = vmatprep.subr.bf16.mxu0 %v3634_v37 }
 0xc20   :  { %v2165_v36 = vsel %vm621_vm11, %v2164_v35, 0.0 }
 0xc21   :  { %2166 = vadd.xlane.f32.xlu0 %v2165_v36 }
 0xc69   :  { %v2262_v38 = vpop.xlane.xlu0 %2261 }
 0xc6a   :  { %vm2263_vm9 = vcmp.eq.f32.partialorder %v4006_v44, %v2262_v38  ;;  %v3282_v44 = vpop.eup %3281 }
 0xc6b   :  { %v2916_v39 = vsel %vm2263_vm9, 1.0, %v3632_v5  ;;  %v1917_v42 = vmul.f32 %v3282_v44, %v1915_v40 }
 0xc6c   :  { %3145 = vmatmul.mubr.msk.f32.vlgmr.msra.gmra.mrb[22].mxu1 %vm359_vm4, %v2916_v39  ;;  %3150 = vmatmul.mubr.msk.f32.vlgmr.msra.gmra.mrb[24].mxu0 %vm359_vm4, %v2916_v39  ;;  %vm1920_vm4 = vcmp.eq.f32.partialorder %v1915_v40, 0.0 }
 0xc6d   :  { %3225 = vmatpush3.bf16.msra.mxu1 %v4191_v2  ;;  %3156 = vmatprep.mubr.msk.f32.mxu1 %vm3633_vm1, %v3632_v5  ;;  %v1919_v29 = vsel %vm1918_vm10, %v1915_v40, %v1917_v42 }
 0xc6e   :  { %3229 = vmatprep.subr.bf16.mxu1 %v3634_v37  ;;  %3163 = vmatprep.mubr.msk.f32.mxu0 %vm3633_vm1, %v3632_v5  ;;  %v1922_v30 = vsel %vm1920_vm4, %v1921_v23, %v1919_v29 }
 0xc6f   :  { %v2003_v48 = vmul.f32 %v2911_v28, %v1922_v30 }
 0xc71   :  { %v2004_v51 = vadd.f32 %v2003_v48, %v1996_v27 }
 0xc73   :  { %v2005_v56 = vmax.f32 %v2004_v51, 0.0 }
 0xcae   :  { %v2167_v41 = vpop.xlane.xlu0 %2166 }
 0xcaf   :  { %3283 = vrsqrt.f32 %v2167_v41  ;;  %vm2170_vm12 = vcmp.eq.f32.partialorder %v2167_v41, inf  ;;  %v2173_v47 = vand.u32 2147483648, %v2167_v41  ;;  %vm2172_vm5 = vcmp.eq.f32.partialorder %v2167_v41, 0.0 }
 0xcb9   :  { %v3284_v45 = vpop.eup %3283 }
 0xcba   :  { %v2169_v21 = vmul.f32 %v3284_v45, %v2167_v41 }
 0xcbc   :  { %v2171_v46 = vsel %vm2170_vm12, %v2167_v41, %v2169_v21  ;;  %v2689_v21 = vld [vmem:[%s4370_s2] sm:$0xff] }
 0xcbd   :  { %v2174_v49 = vsel %vm2172_vm5, %v2173_v47, %v2171_v46  ;;  %v2923_v23 = vadd.f32 -1.0, %v2689_v21 }
 0xcbe   :  { %v2249_v53 = vmul.f32 %v2911_v28, %v2174_v49 }
 0xcef   :  { %v2244_v50 = vpop.f32.mrb[22].mxu0 }
 0xcf0   :  { %v2248_v52 = vadd.f32 %v2244_v50, %v4232_v62  ;;  %v3141_v54 = vpop.f32.mrb[23].mxu0 }
 0xcf2   :  { %v2250_v55 = vadd.f32 %v2249_v53, %v2248_v52  ;;  %v2705_v52 = vld [vmem:[%s4331_s24] sm:$0xff]  ;;  %v2706_v53 = vld [vmem:[%s4331_s24 + $0x8] sm:$0xff]  ;;  %s3635_s24 = smov [#allocation23]  }
 0xcf3   :  { %v3233_v54 = vpack.c.bf16 %v2706_v53, %v2705_v52  ;;  %s2865_s1 = sshll.u32 %s3635_s24, 4  ;;  %s2866_s1 = int_to_ptr.vmem [resolvable:$true] %s2865_s1 }
 0xcf4   :  { %v2251_v57 = vmax.f32 %v2250_v55, 0.0  ;;  %s3577_s9 = scalar_lea.vmem %s2866_s1, 16  ;;  %s3581_s18 = scalar_lea.vmem %s2866_s1, 32 }
 0xcf5   :  { %p3578_p6 = scmp.ne.s32.totalorder %s2866_s1, %s3577_s9  ;;  %p3582_p7 = scmp.lt.s32.totalorder %s2866_s1, %s2866_s1 }
 0xcf6   :  { %v2252_v58 = vadd.f32 %v2251_v57, %v2005_v56  ;;  %p3583_p8 = scmp.lt.s32.totalorder %s3581_s18, %s3577_s9 }
 0xcf8   :  { %p3584_p9 = por %p3583_p8, %p3582_p7 }
 0xcfa   :  { %p3585_p10 = pnand %p3584_p9, %p3578_p6 }
 0xd3f   :  { %v2335_v2 = vpop.f32.mrb[22].mxu1  ;;  %v2405_v3 = vpop.f32.mrb[24].mxu0 }
 0xd40   :  { %v2409_v4 = vsub.f32 %v4144_v43, %v2405_v3  ;;  %v3146_v1 = vpop.f32.mrb[23].mxu1  ;;  %v3151_v6 = vpop.f32.mrb[25].mxu0  ;;  %3157 = vmatmul.mubr.msk.f32.vlgmr.msra.gmra.mrb[24].mxu1 %vm391_vm6, %v2335_v2  ;;  %v1644_v43 = vld [vmem:[%s4329_s22] sm:$0xff] }
 0xd41   :  { %3231 = vmatpush3.bf16.msra.mxu1 %v3230_v61  ;;  %3170 = vmatprep.mubr.msk.f32.mxu1 %vm3633_vm1, %v3632_v5  ;;  %v3227_v0 = vpack.c.bf16 %v1645_v11, %v1644_v43 }
 0xd42   :  { %v2410_v9 = vmul.f32 %v2409_v4, %v2409_v4  ;;  %3235 = vmatprep.subr.bf16.mxu1 %v3634_v37 }
 0xd43   :  { %3228 = vmatpush3.bf16.msra.mxu0 %v3227_v0 }
 0xd44   :  { %3171 = vmatmul.mubr.msk.f32.vlgmr.msra.gmra.mrb[26].mxu1 %vm391_vm6, %v4186_v63  ;;  %v2411_v10 = vsel %vm621_vm11, %v2410_v9, 0.0  ;;  %3232 = vmatprep.subr.bf16.mxu0 %v3634_v37  ;;  %v2922_v37 = vld [vmem:[#allocation17] ss:$0 sm:$0xff] }
 0xd45   :  { %2412 = vadd.xlane.f32.xlu1 %v2411_v10  ;;  %3184 = vmatprep.mubr.msk.f32.mxu1 %vm3633_vm1, %v3632_v5 }
 0xdd2   :  { %v2413_v12 = vpop.xlane.xlu1 %2412 }
 0xdd3   :  { %3285 = vrsqrt.f32 %v2413_v12  ;;  %vm2416_vm11 = vcmp.eq.f32.partialorder %v2413_v12, inf  ;;  %v2419_v16 = vand.u32 2147483648, %v2413_v12  ;;  %vm2418_vm13 = vcmp.eq.f32.partialorder %v2413_v12, 0.0 }
 0xddd   :  { %v3286_v63 = vpop.eup %3285 }
 0xdde   :  { %v2415_v13 = vmul.f32 %v3286_v63, %v2413_v12  ;;  %v2782_v63 = vld [vmem:[#allocation20] sm:$0xff] }
 0xde0   :  { %v2417_v15 = vsel %vm2416_vm11, %v2413_v12, %v2415_v13  ;;  %v2783_v13 = vld [vmem:[#allocation20 + $0x8] sm:$0xff] }
 0xde1   :  { %v2420_v14 = vsel %vm2418_vm13, %v2419_v16, %v2417_v15  ;;  %v3236_v15 = vpack.c.bf16 %v2783_v13, %v2782_v63  ;;  %v2707_v16 = vld [vmem:[#allocation19] sm:$0x1] }
 0xde2   :  { %v2495_v19 = vmul.f32 %v2911_v28, %v2420_v14  ;;  %v2691_v28 = vmul.f32 1e+30, %v2923_v23 }
 0xde3   :  { %3237 = vmatpush3.bf16.msra.mxu1 %v3236_v15 }
 0xe13   :  { %v2490_v17 = vpop.f32.mrb[24].mxu1 }
 0xe14   :  { %v2494_v18 = vadd.f32 %v2490_v17, %v4232_v62  ;;  %v3158_v20 = vpop.f32.mrb[25].mxu1 }
 0xe15   :  { %v2784_v20 = vld [vmem:[#allocation22] sm:$0x1] }
 0xe16   :  { %v2496_v22 = vadd.f32 %v2495_v19, %v2494_v18 }
 0xe17   :  { %v2638_v24 = vpop.f32.mrb[26].mxu1 }
 0xe18   :  { %v2497_v25 = vmax.f32 %v2496_v22, 0.0  ;;  %v3172_v26 = vpop.f32.mrb[27].mxu1 }
 0xe1a   :  { %v2498_v27 = vadd.f32 %v2497_v25, %v2252_v58 }
 0xe1c   :  { %3164 = vmatmul.mubr.msk.f32.vlgmr.msra.gmra.mrb[26].mxu0 %vm391_vm6, %v2498_v27 }
 0xe1d   :  { %3177 = vmatprep.mubr.msk.f32.mxu0 %vm3633_vm1, %v3632_v5  ;;  %3234 = vmatpush3.bf16.msra.mxu0 %v3233_v54 }
 0xeef   :  { %v2568_v31 = vpop.f32.mrb[26].mxu0 }
 0xef0   :  { %v2639_v7 = vadd.f32 %v2638_v24, %v2568_v31  ;;  %v3165_v8 = vpop.f32.mrb[27].mxu0 }
 0xef2   :  { %v2648_v32 = vadd.f32 %v2922_v37, %v2639_v7 }
 0xef4   :  { %v2649_v33 = vmax.f32 %v2648_v32, 0.0 }
 0xef6   :  { %v2650_v62 = vsel %vm391_vm6, %v2649_v33, 0.0 }
 0xef7   :  { %v2651_v34 = vrot.slane %v2650_v62, 4 }
 0xef9   :  { %v2652_v35 = vadd.f32 %v2651_v34, %v2650_v62 }
 0xefb   :  { %v2653_v36 = vrot.slane %v2652_v35, 2 }
 0xefd   :  { %v2654_v38 = vadd.f32 %v2653_v36, %v2652_v35 }
 0xeff   :  { %v2655_v39 = vrot.slane %v2654_v38, 1 }
 0xf01   :  { %v2656_v40 = vadd.f32 %v2655_v39, %v2654_v38 }
 0xf03   :  { %v2657_v41 = vmul.f32 0.125, %v2656_v40 }
 0xf05   :  { %v2658_v44 = vsub.f32 %v2649_v33, %v2657_v41 }
 0xf07   :  { %v2659_v42 = vmul.f32 %v2658_v44, %v2658_v44 }
 0xf09   :  { %v2660_v45 = vsel %vm391_vm6, %v2659_v42, 0.0 }
 0xf0a   :  { %2661 = vadd.xlane.f32.xlu0 %v2660_v45 }
 0xf20   :  { %2694 = vperm.xlu0 %3270, %v2691_v28  }
 0xf97   :  { %v2662_v5 = vpop.xlane.xlu0 %2661 }
 0xf98   :  { %v2663_v29 = vsel %vm1608_vm3, %v2662_v5, 0.0 }
 0xf99   :  { %2664 = vadd.xlane.f32.xlu1 %v2663_v29 }
 0xf9f   :  { %v2695_v3 = vpop.permute.xlu0 %2694 }
0x1026   :  { %v2665_v30 = vpop.xlane.xlu1 %2664 }
0x1027   :  { %v2666_v46 = vrot.slane %v2665_v30, 4 }
0x1029   :  { %v2667_v47 = vadd.f32 %v2666_v46, %v2665_v30 }
0x102b   :  { %v2668_v48 = vrot.slane %v2667_v47, 2 }
0x102d   :  { %v2669_v49 = vadd.f32 %v2668_v48, %v2667_v47 }
0x102f   :  { %v2670_v50 = vrot.slane %v2669_v49, 1 }
0x1031   :  { %v2671_v51 = vadd.f32 %v2670_v50, %v2669_v49 }
0x1033   :  { %3242 = vpush %v2671_v51 }
0x1064   :  { %s3243_s23 = spop %3242 }
0x1065   :  { %s2675_s5 = smul.f32 0.125, %s3243_s23 }
0x1067   :  { %s2676_s4 = sadd.f32 1e-06, %s2675_s5 }
0x1069   :  { %v2677_v55 = vstv %s2676_s4 }
0x106a   :  { %3287 = vrsqrt.f32 %v2677_v55  ;;  %vm2680_vm1 = vcmp.eq.f32.partialorder %v2677_v55, inf  ;;  %v2683_v58 = vand.u32 2147483648, %v2677_v55  ;;  %vm2682_vm3 = vcmp.eq.f32.partialorder %v2677_v55, 0.0 }
0x1074   :  { %v3288_v56 = vpop.eup %3287 }
0x1075   :  { %v2679_v57 = vmul.f32 %v3288_v56, %v2677_v55 }
0x1077   :  { %v2681_v59 = vsel %vm2680_vm1, %v2677_v55, %v2679_v57 }
0x1078   :  { %v2684_v60 = vsel %vm2682_vm3, %v2683_v58, %v2681_v59 }
0x1079   :  { %3244 = vpush %v2684_v60 }
0x10aa   :  { %s3245_s20 = spop %3244 }
0x10ab   :  { %v2686_v61 = vstv %s3245_s20 }
0x10ac   :  { %3289 = vrcp.f32 %v2686_v61 }
0x10b6   :  { %v3290_v2 = vpop.eup %3289 }
0x10b7   :  { %v2688_v4 = vmul.f32 %v3290_v2, %v2658_v44 }
0x10b9   :  { %v2697_v1 = vadd.f32 %v2695_v3, %v2688_v4 }
0x10bb   :  { %v2698_v6 = vsel %vm391_vm6, %v2697_v1, -inf }
0x10bc   :  { %v2699_v9 = vrot.slane %v2698_v6, 4 }
0x10be   :  { %v2700_v10 = vmax.f32 %v2698_v6, %v2699_v9 }
0x10c0   :  { %v2701_v43 = vrot.slane %v2700_v10, 2 }
0x10c2   :  { %v2702_v11 = vmax.f32 %v2700_v10, %v2701_v43 }
0x10c4   :  { %v2703_v0 = vrot.slane %v2702_v11, 1 }
0x10c6   :  { %v2704_v12 = vmax.f32 %v2702_v11, %v2703_v0 }
0x10c8   :  { %3178 = vmatmul.mubr.msk.f32.vlgmr.msra.gmra.mrb[28].mxu0 %vm391_vm6, %v2704_v12 }
0x119b   :  { %v2777_v14 = vpop.f32.mrb[28].mxu0 }
0x119c   :  { %v2778_v17 = vadd.f32 %v2777_v14, %v2707_v16  ;;  %v3179_v18 = vpop.f32.mrb[29].mxu0 }
0x119e   :  { %v2781_v19 = vmax.f32 %v2778_v17, 0.0 }
0x11a0   :  { %3185 = vmatmul.mubr.msk.f32.vlgmr.msra.gmra.mrb[28].mxu1 %vm391_vm6, %v2781_v19 }
0x1273   :  { %v2854_v22 = vpop.f32.mrb[28].mxu1 }
0x1274   :  { %v2855_v24 = vadd.f32 %v2854_v22, %v2784_v20  ;;  %v3186_v25 = vpop.f32.mrb[29].mxu1 }
0x1276   :  { %2858 = vst [vmem:[#allocation23] sm:$0x1] %v2855_v24 }
0x1277   :  { %3588 = shalt.err (!%p3585_p10)
}
0x1278   :  { %s3589_s15 = scalar_lea.hbm %s4335_s28, 16 }
0x1279   :  { %p3590_p11 = scmp.ne.s32.totalorder %s4335_s28, %s3589_s15  ;;  %p3593_p12 = scmp.lt.u32.totalorder %s3589_s15, %s4335_s28 }
0x127b   :  { %p3595_p13 = pnand %p3593_p12, %p3590_p11 }
0x127d   :  { %3598 = shalt.err (!%p3595_p13)
}
0x127e   :  { %2868 = dma.vmem_to_hbm [thread:$0]  %s2866_s1, 16, %s4335_s28, [#allocation4]  }
0x127f   :  { %3613 = dma.done.wait [#allocation4], 16  }
0x1280   :  { %3614 = vsyncadd [#allocation4], 4294967280 }
0x1281   :  { %2872 = vsyncpa [#allocation3], 1 }
0x1282   :  { %2873 = vsyncpa [#allocation6], 1 }
0x1283   :  { %2874 = vsyncpa [#allocation9], 1 }
0x1284   :  { %2875 = vsyncpa [#allocation12], 1 }
0x1285   :  { %2876 = vsyncpa [#allocation15], 1 }
0x1286   :  { %2877 = vsyncpa [#allocation18], 1 }
0x1287   :  { %2878 = vsyncpa [#allocation21], 1 }
0x1288   :  { %2879 = vsyncpa [#allocation4], 1 }

</bundles_post_ra>
